<compile_context>
chip_gen: v7x
topology: tpu7x:2x2x1
jax: 0.10.0
libtpu: 0.0.40
codegen_flags: <defaults>
</compile_context>

<pallas_src>
import math
import functools

import numpy as np
import jax
import jax.numpy as jnp
from jax import lax
from jax.experimental import pallas as pl
from jax.experimental.pallas import tpu as pltpu


def neighborhood_windows(L, KS):
    """Same as DNALayer.NeighborhoodWindows (KS must be odd)."""
    NS = KS // 2
    A = np.zeros((L, KS), dtype=np.int64)
    for i in range(L):
        left = max(i - NS, 0) + (i + NS >= L) * (L - i - NS - 1)
        r = NS + (i < NS) * (NS - i) + (i + NS >= L) * (L - i - 1 - NS)
        right = i + r
        A[i] = np.arange(left, right + 1)
    return A


def dna_kernel(qT_ref, kT_ref, vT_ref, auxT_ref, posb_ref,
               w1T_ref, b1T_ref, w2T_ref, b2T_ref, w3T_ref,
               wqT_ref, bqT_ref, wkT_ref, bkT_ref, wvT_ref, bvT_ref,
               woT_ref, boT_ref, out_ref, *, H, K, dk, dv, dh, use_bf16):
    f32 = jnp.float32
    L = qT_ref.shape[2]
    KL = K * L

    def proj_mm(w, x):
        # Optionally run the big projection matmuls in bf16 on the MXU
        # (f32 accumulation).  Interpolation / softmax always stay f32.
        if use_bf16:
            w = w.astype(jnp.bfloat16)
            x = x.astype(jnp.bfloat16)
        return jnp.dot(w, x, preferred_element_type=f32)

    qT = qT_ref[0]        # (d_model, L)
    kT = kT_ref[0]        # (d_model, L)
    vT = vT_ref[0]        # (d_model, L)
    auxT = auxT_ref[0]    # (H*dk, L)
    posb = posb_ref[...]  # (1, K*L)  static neighbor positions (k-major: s = k*L + l)

    # ---- offset MLP (all heads fused via block-diagonal weights), lane axis = L ----
    # Offsets depend only on the aux feature at the *neighbor* position, so we
    # evaluate the MLP once per position and gather afterwards (K x less work,
    # no K x aux duplication in HBM).
    h1 = jnp.maximum(
        jnp.dot(w1T_ref[...], auxT, preferred_element_type=f32) + b1T_ref[...], 0.0)   # (H*2dk, L)
    h2 = jnp.maximum(
        jnp.dot(w2T_ref[...], h1, preferred_element_type=f32) + b2T_ref[...], 0.0)     # (H*dk, L)
    off_full = jnp.dot(w3T_ref[...], h2, preferred_element_type=f32)                   # (H, L)

    # gather offsets at the static neighbor positions: one-hot matmul
    iota_row = lax.broadcasted_iota(jnp.int32, (L, KL), 0).astype(f32)  # row index j
    gather = (iota_row == posb).astype(f32)                             # (L, K*L)
    off_g = jnp.dot(off_full, gather, preferred_element_type=f32)       # (H, K*L)

    # ---- bilinear sampling of raw K/V at fractional positions (grid_sample,
    #      align_corners=True, zero padding), one fused K+V matmul per head ----
    # tent weight w(j) = max(0, 1 - |pos - j|) == wl*onehot(x0) + wr*onehot(x0+1)
    sk_parts = []
    sv_parts = []
    for h in range(H):
        pos_h = posb + off_g[h:h + 1, :]                                 # (1, K*L)
        w_interp = jnp.maximum(1.0 - jnp.abs(pos_h - iota_row), 0.0)     # (L, K*L), f32
        kv_h = jnp.concatenate(
            [kT[h * dh:(h + 1) * dh, :], vT[h * dh:(h + 1) * dh, :]], axis=0)  # (2*dh, L)
        skv = jnp.dot(kv_h, w_interp, preferred_element_type=f32)        # (2*dh, K*L)
        sk_parts.append(skv[:dh])
        sv_parts.append(skv[dh:])
    sk_catT = jnp.concatenate(sk_parts, axis=0)                          # (d_model, K*L)
    sv_catT = jnp.concatenate(sv_parts, axis=0)                          # (d_model, K*L)

    # ---- fused projections (single d_model-wide contractions) ----
    # Note: the 1/sqrt(dk) attention scale is folded into wq/bq host-side.
    q_projT = proj_mm(wqT_ref[...], qT) + bqT_ref[...]                   # (H*dk, L)
    k_projT = proj_mm(wkT_ref[...], sk_catT) + bkT_ref[...]              # (H*dk, K*L)
    v_projT = proj_mm(wvT_ref[...], sv_catT) + bvT_ref[...]              # (H*dv, K*L)

    # ---- attention over the K neighbors, lane axis = L ----
    logits = []
    for kk in range(K):
        prod = q_projT * k_projT[:, kk * L:(kk + 1) * L]                 # (H*dk, L)
        logits.append(jnp.sum(prod.reshape(H, dk, L), axis=1))           # (H, L)
    m = logits[0]
    for kk in range(1, K):
        m = jnp.maximum(m, logits[kk])
    ps = [jnp.exp(lg - m) for lg in logits]
    denom = ps[0]
    for kk in range(1, K):
        denom = denom + ps[kk]
    inv = pl.reciprocal(denom, approx=True)                              # EUP slot
    inv = inv * (2.0 - denom * inv)                                      # one Newton step -> ~f32 exact
    # TODO(synk): attention dropout would be applied to ps[k]*inv here in training mode.

    v3 = v_projT.reshape(H, dv, KL)
    out3 = (ps[0] * inv)[:, None, :] * v3[:, :, 0:L]                     # (H, dv, L)
    for kk in range(1, K):
        out3 = out3 + (ps[kk] * inv)[:, None, :] * v3[:, :, kk * L:(kk + 1) * L]
    outT = out3.reshape(H * dv, L)                                       # (H*dv, L)

    # ---- fused output projection ----
    y = proj_mm(woT_ref[...], outT) + boT_ref[...]                       # (d_model, L)
    out_ref[0] = y


def dna_layer_pallas(q, k, v, aux, params, idx, H, K_sz, scale=None,
                     use_bf16_mxu=False):
    B, L, d_model = q.shape
    dk = params['wq'].shape[1] // H
    dv = params['wv'].shape[1] // H
    dh = d_model // H
    KL = K_sz * L

    # --- layout plumbing (all static / cheap XLA ops outside the kernel) ---
    qT = jnp.swapaxes(q, 1, 2)       # (B, d_model, L)
    kT = jnp.swapaxes(k, 1, 2)
    vT = jnp.swapaxes(v, 1, 2)
    auxT = jnp.swapaxes(aux, 1, 2)   # (B, H*dk, L)  -- no Kx neighborhood duplication

    # static neighbor positions, k-major flattening: s = k*L + l
    posb = jnp.asarray(np.asarray(idx).T.reshape(1, KL), dtype=jnp.float32)

    def block_diag(m, reps):
        r, c = m.shape
        out = jnp.zeros((reps * r, reps * c), m.dtype)
        for h in range(reps):
            out = out.at[h * r:(h + 1) * r, h * c:(h + 1) * c].set(m)
        return out

    # block-diagonal all-head offset-MLP weights (transposed for (feat, L) layout)
    w1_blkT = block_diag(params['w1'], H).T          # (H*2dk, H*dk)
    w2_blkT = block_diag(params['w2'], H).T          # (H*dk, H*2dk)
    w3_blkT = block_diag(params['w3'], H).T          # (H, H*dk)
    b1T = jnp.tile(params['b1'], (1, H)).T           # (H*2dk, 1)
    b2T = jnp.tile(params['b2'], (1, H)).T           # (H*dk, 1)

    # fold the attention scale into the query projection (done once host-side)
    sc = scale if scale is not None else 1.0 / math.sqrt(dk)
    wqT, bqT = params['wq'].T * sc, params['bq'].T * sc   # (H*dk, d_model), (H*dk, 1)
    wkT, bkT = params['wk'].T, params['bk'].T
    wvT, bvT = params['wv'].T, params['bv'].T
    woT, boT = params['wo'].T, params['bo'].T        # (d_model, H*dv), (d_model, 1)

    kern = functools.partial(dna_kernel, H=H, K=K_sz, dk=dk, dv=dv, dh=dh,
                             use_bf16=use_bf16_mxu)

    def batch_spec(rows, cols):
        return pl.BlockSpec((1, rows, cols), lambda b: (b, 0, 0))

    def const_spec(shape):
        n = len(shape)
        return pl.BlockSpec(shape, lambda b, _n=n: (0,) * _n)

    in_specs = [
        batch_spec(d_model, L),          # qT
        batch_spec(d_model, L),          # kT
        batch_spec(d_model, L),          # vT
        batch_spec(H * dk, L),           # auxT
        const_spec((1, KL)),             # posb
        const_spec(w1_blkT.shape), const_spec(b1T.shape),
        const_spec(w2_blkT.shape), const_spec(b2T.shape),
        const_spec(w3_blkT.shape),
        const_spec(wqT.shape), const_spec(bqT.shape),
        const_spec(wkT.shape), const_spec(bkT.shape),
        const_spec(wvT.shape), const_spec(bvT.shape),
        const_spec(woT.shape), const_spec(boT.shape),
    ]
    out_spec = pl.BlockSpec((1, d_model, L), lambda b: (b, 0, 0))

    yT = pl.pallas_call(
        kern,
        out_shape=jax.ShapeDtypeStruct((B, d_model, L), jnp.float32),
        grid=(B,),
        in_specs=in_specs,
        out_specs=out_spec,
        compiler_params=pltpu.CompilerParams(dimension_semantics=("parallel",)),
    )(qT, kT, vT, auxT, posb,
      w1_blkT, b1T, w2_blkT, b2T, w3_blkT,
      wqT, bqT, wkT, bkT, wvT, bvT, woT, boT)

    return jnp.swapaxes(yT, 1, 2)      # (B, L, d_model)


def dna_layer_ref(q, k, v, aux, params, idx, H):
    """Pure-JAX reference mirroring the PyTorch forward (eval mode)."""
    B, L, d_model = q.shape
    K_sz = idx.shape[1]
    dk = params['wq'].shape[1] // H
    dv = params['wv'].shape[1] // H
    dh = d_model // H

    aux_bh = aux.reshape(B, L, H, dk).transpose(0, 2, 1, 3)
    aux_win = aux_bh[:, :, idx, :]                                   # (B,H,L,K,dk)
    h1 = jax.nn.relu(aux_win @ params['w1'] + params['b1'][0])
    h2 = jax.nn.relu(h1 @ params['w2'] + params['b2'][0])
    off = (h2 @ params['w3'])[..., 0]                                # (B,H,L,K)
    pos = jnp.asarray(idx, jnp.float32)[None, None] + off

    # grid_sample(bilinear, align_corners=True, zero padding) along seq axis
    x0 = jnp.floor(pos)
    wr = pos - x0
    wl = 1.0 - wr
    j = jnp.arange(L, dtype=jnp.float32)
    w_interp = (wl[..., None] * (j == x0[..., None]).astype(jnp.float32)
                + wr[..., None] * (j == (x0[..., None] + 1.0)).astype(jnp.float32))
    k_heads = k.reshape(B, L, H, dh).transpose(0, 2, 1, 3)           # (B,H,L,dh)
    v_heads = v.reshape(B, L, H, dh).transpose(0, 2, 1, 3)
    sk = jnp.einsum('bhlkj,bhjd->bhlkd', w_interp, k_heads)
    sv = jnp.einsum('bhlkj,bhjd->bhlkd', w_interp, v_heads)
    sk_cat = sk.transpose(0, 2, 3, 1, 4).reshape(B, L, K_sz, d_model)
    sv_cat = sv.transpose(0, 2, 3, 1, 4).reshape(B, L, K_sz, d_model)

    Qp = q @ params['wq'] + params['bq'][0]
    Kp = sk_cat @ params['wk'] + params['bk'][0]
    Vp = sv_cat @ params['wv'] + params['bv'][0]
    Qh = Qp.reshape(B, L, H, dk).transpose(0, 2, 1, 3)
    Kh = Kp.reshape(B, L, K_sz, H, dk).transpose(0, 3, 1, 2, 4)
    Vh = Vp.reshape(B, L, K_sz, H, dv).transpose(0, 3, 1, 2, 4)

    scale = 1.0 / math.sqrt(dk)
    logits = jnp.einsum('bhld,bhlkd->bhlk', Qh, Kh) * scale
    A = jax.nn.softmax(logits, axis=-1)
    out = jnp.einsum('bhlk,bhlkd->bhld', A, Vh)
    out = out.transpose(0, 2, 1, 3).reshape(B, L, H * dv)
    return out @ params['wo'] + params['bo'][0]


if __name__ == "__main__":
    B, L, d_model, H, DNA_size = 2, 16, 32, 4, 5   # DNA_size must be odd
    dk = dv = d_model // H

    key = jax.random.PRNGKey(0)
    ks = jax.random.split(key, 20)

    def rnd(kk, shape, s=0.1):
        return jax.random.normal(kk, shape, dtype=jnp.float32) * s

    # Linear weights stored pre-transposed (in_features, out_features).
    params = {
        'wq': rnd(ks[0], (d_model, H * dk)), 'bq': rnd(ks[1], (1, H * dk)),
        'wk': rnd(ks[2], (d_model, H * dk)), 'bk': rnd(ks[3], (1, H * dk)),
        'wv': rnd(ks[4], (d_model, H * dv)), 'bv': rnd(ks[5], (1, H * dv)),
        'wo': rnd(ks[6], (H * dv, d_model)), 'bo': rnd(ks[7], (1, d_model)),
        'w1': rnd(ks[8], (dk, 2 * dk), 0.3), 'b1': rnd(ks[9], (1, 2 * dk), 0.3),
        'w2': rnd(ks[10], (2 * dk, dk), 0.3), 'b2': rnd(ks[11], (1, dk), 0.3),
        'w3': rnd(ks[12], (dk, 1), 0.3),
    }

    q = rnd(ks[13], (B, L, d_model), 1.0)
    k = rnd(ks[14], (B, L, d_model), 1.0)
    v = rnd(ks[15], (B, L, d_model), 1.0)
    aux = rnd(ks[16], (B, L, H * dk), 1.0)

    idx = neighborhood_windows(L, DNA_size)        # (L, K) static integer windows

    # use_bf16_mxu=True is available for v6e/v7x speed (f32 accumulation), kept
    # off here so the f32 reference comparison stays tight.
    out = dna_layer_pallas(q, k, v, aux, params, idx, H, DNA_size,
                           use_bf16_mxu=False)
    out = jax.block_until_ready(out)

    ref = dna_layer_ref(q, k, v, aux, params, idx, H)
    np.testing.assert_allclose(np.asarray(out), np.asarray(ref), atol=3e-4, rtol=3e-4)
    print("KERNEL_OK")
</pallas_src>

<mosaic_0001>
module attributes {stable_mosaic.version = 11 : i64} {
  func.func @dna_kernel(%arg0: i32, %arg1: memref<1x32x16xf32, #tpu.memory_space<vmem>>, %arg2: memref<1x32x16xf32, #tpu.memory_space<vmem>>, %arg3: memref<1x32x16xf32, #tpu.memory_space<vmem>>, %arg4: memref<1x32x16xf32, #tpu.memory_space<vmem>>, %arg5: memref<1x80xf32, #tpu.memory_space<vmem>>, %arg6: memref<64x32xf32, #tpu.memory_space<vmem>>, %arg7: memref<64x1xf32, #tpu.memory_space<vmem>>, %arg8: memref<32x64xf32, #tpu.memory_space<vmem>>, %arg9: memref<32x1xf32, #tpu.memory_space<vmem>>, %arg10: memref<4x32xf32, #tpu.memory_space<vmem>>, %arg11: memref<32x32xf32, #tpu.memory_space<vmem>>, %arg12: memref<32x1xf32, #tpu.memory_space<vmem>>, %arg13: memref<32x32xf32, #tpu.memory_space<vmem>>, %arg14: memref<32x1xf32, #tpu.memory_space<vmem>>, %arg15: memref<32x32xf32, #tpu.memory_space<vmem>>, %arg16: memref<32x1xf32, #tpu.memory_space<vmem>>, %arg17: memref<32x32xf32, #tpu.memory_space<vmem>>, %arg18: memref<32x1xf32, #tpu.memory_space<vmem>>, %arg19: memref<1x32x16xf32, #tpu.memory_space<vmem>>) attributes {dimension_semantics = [#tpu.dimension_semantics<parallel>], iteration_bounds = array<i64: 2>, scalar_prefetch = 0 : i64, scratch_operands = 0 : i64, tpu.core_type = #tpu.core_type<tc>, window_params = [{transform_indices = @transform_0, window_bounds = array<i64: 1, 32, 16>}, {transform_indices = @transform_1, window_bounds = array<i64: 1, 32, 16>}, {transform_indices = @transform_2, window_bounds = array<i64: 1, 32, 16>}, {transform_indices = @transform_3, window_bounds = array<i64: 1, 32, 16>}, {pipeline_mode = #tpu.pipeline_mode<synchronous>, transform_indices = @transform_4, window_bounds = array<i64: 1, 80>}, {pipeline_mode = #tpu.pipeline_mode<synchronous>, transform_indices = @transform_5, window_bounds = array<i64: 64, 32>}, {pipeline_mode = #tpu.pipeline_mode<synchronous>, transform_indices = @transform_6, window_bounds = array<i64: 64, 1>}, {pipeline_mode = #tpu.pipeline_mode<synchronous>, transform_indices = @transform_7, window_bounds = array<i64: 32, 64>}, {pipeline_mode = #tpu.pipeline_mode<synchronous>, transform_indices = @transform_8, window_bounds = array<i64: 32, 1>}, {pipeline_mode = #tpu.pipeline_mode<synchronous>, transform_indices = @transform_9, window_bounds = array<i64: 4, 32>}, {pipeline_mode = #tpu.pipeline_mode<synchronous>, transform_indices = @transform_10, window_bounds = array<i64: 32, 32>}, {pipeline_mode = #tpu.pipeline_mode<synchronous>, transform_indices = @transform_11, window_bounds = array<i64: 32, 1>}, {pipeline_mode = #tpu.pipeline_mode<synchronous>, transform_indices = @transform_12, window_bounds = array<i64: 32, 32>}, {pipeline_mode = #tpu.pipeline_mode<synchronous>, transform_indices = @transform_13, window_bounds = array<i64: 32, 1>}, {pipeline_mode = #tpu.pipeline_mode<synchronous>, transform_indices = @transform_14, window_bounds = array<i64: 32, 32>}, {pipeline_mode = #tpu.pipeline_mode<synchronous>, transform_indices = @transform_15, window_bounds = array<i64: 32, 1>}, {pipeline_mode = #tpu.pipeline_mode<synchronous>, transform_indices = @transform_16, window_bounds = array<i64: 32, 32>}, {pipeline_mode = #tpu.pipeline_mode<synchronous>, transform_indices = @transform_17, window_bounds = array<i64: 32, 1>}, {transform_indices = @transform_18, window_bounds = array<i64: 1, 32, 16>}]} {
    %c0 = arith.constant 0 : index
    %c0_0 = arith.constant 0 : index
    %c0_1 = arith.constant 0 : index
    %0 = vector.load %arg1[%c0, %c0_0, %c0_1] : memref<1x32x16xf32, #tpu.memory_space<vmem>>, vector<1x32x16xf32>
    %1 = vector.shape_cast %0 : vector<1x32x16xf32> to vector<32x16xf32>
    %c0_2 = arith.constant 0 : index
    %c0_3 = arith.constant 0 : index
    %c0_4 = arith.constant 0 : index
    %2 = vector.load %arg2[%c0_2, %c0_3, %c0_4] : memref<1x32x16xf32, #tpu.memory_space<vmem>>, vector<1x32x16xf32>
    %3 = vector.shape_cast %2 : vector<1x32x16xf32> to vector<32x16xf32>
    %c0_5 = arith.constant 0 : index
    %c0_6 = arith.constant 0 : index
    %c0_7 = arith.constant 0 : index
    %4 = vector.load %arg3[%c0_5, %c0_6, %c0_7] : memref<1x32x16xf32, #tpu.memory_space<vmem>>, vector<1x32x16xf32>
    %5 = vector.shape_cast %4 : vector<1x32x16xf32> to vector<32x16xf32>
    %c0_8 = arith.constant 0 : index
    %c0_9 = arith.constant 0 : index
    %c0_10 = arith.constant 0 : index
    %6 = vector.load %arg4[%c0_8, %c0_9, %c0_10] : memref<1x32x16xf32, #tpu.memory_space<vmem>>, vector<1x32x16xf32>
    %7 = vector.shape_cast %6 : vector<1x32x16xf32> to vector<32x16xf32>
    %c0_11 = arith.constant 0 : index
    %c0_12 = arith.constant 0 : index
    %8 = vector.load %arg5[%c0_11, %c0_12] : memref<1x80xf32, #tpu.memory_space<vmem>>, vector<1x80xf32>
    %c0_13 = arith.constant 0 : index
    %c0_14 = arith.constant 0 : index
    %9 = vector.load %arg6[%c0_13, %c0_14] : memref<64x32xf32, #tpu.memory_space<vmem>>, vector<64x32xf32>
    %cst = arith.constant dense<0.000000e+00> : vector<64x16xf32>
    %10 = tpu.matmul %9, %7, %cst {dimension_numbers = #tpu.dot_dimension_numbers<[1], [0], [0], [1], [0, 0, 1, 1], [], []>} : vector<64x32xf32>, vector<32x16xf32>, vector<64x16xf32> -> vector<64x16xf32>
    %c0_15 = arith.constant 0 : index
    %c0_16 = arith.constant 0 : index
    %11 = vector.load %arg7[%c0_15, %c0_16] : memref<64x1xf32, #tpu.memory_space<vmem>>, vector<64x1xf32>
    %12 = vector.broadcast %11 : vector<64x1xf32> to vector<64x16xf32>
    %13 = arith.addf %10, %12 : vector<64x16xf32>
    %cst_17 = arith.constant 0.000000e+00 : f32
    %14 = vector.broadcast %cst_17 : f32 to vector<64x16xf32>
    %15 = arith.maximumf %13, %14 : vector<64x16xf32>
    %c0_18 = arith.constant 0 : index
    %c0_19 = arith.constant 0 : index
    %16 = vector.load %arg8[%c0_18, %c0_19] : memref<32x64xf32, #tpu.memory_space<vmem>>, vector<32x64xf32>
    %cst_20 = arith.constant dense<0.000000e+00> : vector<32x16xf32>
    %17 = tpu.matmul %16, %15, %cst_20 {dimension_numbers = #tpu.dot_dimension_numbers<[1], [0], [0], [1], [0, 0, 1, 1], [], []>} : vector<32x64xf32>, vector<64x16xf32>, vector<32x16xf32> -> vector<32x16xf32>
    %c0_21 = arith.constant 0 : index
    %c0_22 = arith.constant 0 : index
    %18 = vector.load %arg9[%c0_21, %c0_22] : memref<32x1xf32, #tpu.memory_space<vmem>>, vector<32x1xf32>
    %19 = vector.broadcast %18 : vector<32x1xf32> to vector<32x16xf32>
    %20 = arith.addf %17, %19 : vector<32x16xf32>
    %cst_23 = arith.constant 0.000000e+00 : f32
    %21 = vector.broadcast %cst_23 : f32 to vector<32x16xf32>
    %22 = arith.maximumf %20, %21 : vector<32x16xf32>
    %c0_24 = arith.constant 0 : index
    %c0_25 = arith.constant 0 : index
    %23 = vector.load %arg10[%c0_24, %c0_25] : memref<4x32xf32, #tpu.memory_space<vmem>>, vector<4x32xf32>
    %cst_26 = arith.constant dense<0.000000e+00> : vector<4x16xf32>
    %24 = tpu.matmul %23, %22, %cst_26 {dimension_numbers = #tpu.dot_dimension_numbers<[1], [0], [0], [1], [0, 0, 1, 1], [], []>} : vector<4x32xf32>, vector<32x16xf32>, vector<4x16xf32> -> vector<4x16xf32>
    %25 = tpu.iota {dimensions = array<i32: 0>} : vector<16x80xi32>
    %26 = arith.sitofp %25 : vector<16x80xi32> to vector<16x80xf32>
    %27 = vector.broadcast %8 : vector<1x80xf32> to vector<16x80xf32>
    %28 = arith.cmpf oeq, %26, %27 : vector<16x80xf32>
    %29 = arith.extui %28 : vector<16x80xi1> to vector<16x80xi32>
    %30 = arith.sitofp %29 : vector<16x80xi32> to vector<16x80xf32>
    %cst_27 = arith.constant dense<0.000000e+00> : vector<4x80xf32>
    %31 = tpu.matmul %24, %30, %cst_27 {dimension_numbers = #tpu.dot_dimension_numbers<[1], [0], [0], [1], [0, 0, 1, 1], [], []>} : vector<4x16xf32>, vector<16x80xf32>, vector<4x80xf32> -> vector<4x80xf32>
    %32 = vector.extract_strided_slice %31 {offsets = [0, 0], sizes = [1, 80], strides = [1, 1]} : vector<4x80xf32> to vector<1x80xf32>
    %33 = arith.addf %8, %32 : vector<1x80xf32>
    %34 = vector.broadcast %33 : vector<1x80xf32> to vector<16x80xf32>
    %35 = arith.subf %34, %26 : vector<16x80xf32>
    %36 = math.absf %35 : vector<16x80xf32>
    %cst_28 = arith.constant 1.000000e+00 : f32
    %37 = vector.broadcast %cst_28 : f32 to vector<16x80xf32>
    %38 = arith.subf %37, %36 : vector<16x80xf32>
    %cst_29 = arith.constant 0.000000e+00 : f32
    %39 = vector.broadcast %cst_29 : f32 to vector<16x80xf32>
    %40 = arith.maximumf %38, %39 : vector<16x80xf32>
    %41 = vector.extract_strided_slice %3 {offsets = [0, 0], sizes = [8, 16], strides = [1, 1]} : vector<32x16xf32> to vector<8x16xf32>
    %42 = vector.extract_strided_slice %5 {offsets = [0, 0], sizes = [8, 16], strides = [1, 1]} : vector<32x16xf32> to vector<8x16xf32>
    %43 = tpu.concatenate %41, %42 in 0 : vector<8x16xf32>, vector<8x16xf32> -> vector<16x16xf32>
    %cst_30 = arith.constant dense<0.000000e+00> : vector<16x80xf32>
    %44 = tpu.matmul %43, %40, %cst_30 {dimension_numbers = #tpu.dot_dimension_numbers<[1], [0], [0], [1], [0, 0, 1, 1], [], []>} : vector<16x16xf32>, vector<16x80xf32>, vector<16x80xf32> -> vector<16x80xf32>
    %45 = vector.extract_strided_slice %44 {offsets = [0, 0], sizes = [8, 80], strides = [1, 1]} : vector<16x80xf32> to vector<8x80xf32>
    %46 = vector.extract_strided_slice %44 {offsets = [8, 0], sizes = [8, 80], strides = [1, 1]} : vector<16x80xf32> to vector<8x80xf32>
    %47 = vector.extract_strided_slice %31 {offsets = [1, 0], sizes = [1, 80], strides = [1, 1]} : vector<4x80xf32> to vector<1x80xf32>
    %48 = arith.addf %8, %47 : vector<1x80xf32>
    %49 = vector.broadcast %48 : vector<1x80xf32> to vector<16x80xf32>
    %50 = arith.subf %49, %26 : vector<16x80xf32>
    %51 = math.absf %50 : vector<16x80xf32>
    %cst_31 = arith.constant 1.000000e+00 : f32
    %52 = vector.broadcast %cst_31 : f32 to vector<16x80xf32>
    %53 = arith.subf %52, %51 : vector<16x80xf32>
    %cst_32 = arith.constant 0.000000e+00 : f32
    %54 = vector.broadcast %cst_32 : f32 to vector<16x80xf32>
    %55 = arith.maximumf %53, %54 : vector<16x80xf32>
    %56 = vector.extract_strided_slice %3 {offsets = [8, 0], sizes = [8, 16], strides = [1, 1]} : vector<32x16xf32> to vector<8x16xf32>
    %57 = vector.extract_strided_slice %5 {offsets = [8, 0], sizes = [8, 16], strides = [1, 1]} : vector<32x16xf32> to vector<8x16xf32>
    %58 = tpu.concatenate %56, %57 in 0 : vector<8x16xf32>, vector<8x16xf32> -> vector<16x16xf32>
    %cst_33 = arith.constant dense<0.000000e+00> : vector<16x80xf32>
    %59 = tpu.matmul %58, %55, %cst_33 {dimension_numbers = #tpu.dot_dimension_numbers<[1], [0], [0], [1], [0, 0, 1, 1], [], []>} : vector<16x16xf32>, vector<16x80xf32>, vector<16x80xf32> -> vector<16x80xf32>
    %60 = vector.extract_strided_slice %59 {offsets = [0, 0], sizes = [8, 80], strides = [1, 1]} : vector<16x80xf32> to vector<8x80xf32>
    %61 = vector.extract_strided_slice %59 {offsets = [8, 0], sizes = [8, 80], strides = [1, 1]} : vector<16x80xf32> to vector<8x80xf32>
    %62 = vector.extract_strided_slice %31 {offsets = [2, 0], sizes = [1, 80], strides = [1, 1]} : vector<4x80xf32> to vector<1x80xf32>
    %63 = arith.addf %8, %62 : vector<1x80xf32>
    %64 = vector.broadcast %63 : vector<1x80xf32> to vector<16x80xf32>
    %65 = arith.subf %64, %26 : vector<16x80xf32>
    %66 = math.absf %65 : vector<16x80xf32>
    %cst_34 = arith.constant 1.000000e+00 : f32
    %67 = vector.broadcast %cst_34 : f32 to vector<16x80xf32>
    %68 = arith.subf %67, %66 : vector<16x80xf32>
    %cst_35 = arith.constant 0.000000e+00 : f32
    %69 = vector.broadcast %cst_35 : f32 to vector<16x80xf32>
    %70 = arith.maximumf %68, %69 : vector<16x80xf32>
    %71 = vector.extract_strided_slice %3 {offsets = [16, 0], sizes = [8, 16], strides = [1, 1]} : vector<32x16xf32> to vector<8x16xf32>
    %72 = vector.extract_strided_slice %5 {offsets = [16, 0], sizes = [8, 16], strides = [1, 1]} : vector<32x16xf32> to vector<8x16xf32>
    %73 = tpu.concatenate %71, %72 in 0 : vector<8x16xf32>, vector<8x16xf32> -> vector<16x16xf32>
    %cst_36 = arith.constant dense<0.000000e+00> : vector<16x80xf32>
    %74 = tpu.matmul %73, %70, %cst_36 {dimension_numbers = #tpu.dot_dimension_numbers<[1], [0], [0], [1], [0, 0, 1, 1], [], []>} : vector<16x16xf32>, vector<16x80xf32>, vector<16x80xf32> -> vector<16x80xf32>
    %75 = vector.extract_strided_slice %74 {offsets = [0, 0], sizes = [8, 80], strides = [1, 1]} : vector<16x80xf32> to vector<8x80xf32>
    %76 = vector.extract_strided_slice %74 {offsets = [8, 0], sizes = [8, 80], strides = [1, 1]} : vector<16x80xf32> to vector<8x80xf32>
    %77 = vector.extract_strided_slice %31 {offsets = [3, 0], sizes = [1, 80], strides = [1, 1]} : vector<4x80xf32> to vector<1x80xf32>
    %78 = arith.addf %8, %77 : vector<1x80xf32>
    %79 = vector.broadcast %78 : vector<1x80xf32> to vector<16x80xf32>
    %80 = arith.subf %79, %26 : vector<16x80xf32>
    %81 = math.absf %80 : vector<16x80xf32>
    %cst_37 = arith.constant 1.000000e+00 : f32
    %82 = vector.broadcast %cst_37 : f32 to vector<16x80xf32>
    %83 = arith.subf %82, %81 : vector<16x80xf32>
    %cst_38 = arith.constant 0.000000e+00 : f32
    %84 = vector.broadcast %cst_38 : f32 to vector<16x80xf32>
    %85 = arith.maximumf %83, %84 : vector<16x80xf32>
    %86 = vector.extract_strided_slice %3 {offsets = [24, 0], sizes = [8, 16], strides = [1, 1]} : vector<32x16xf32> to vector<8x16xf32>
    %87 = vector.extract_strided_slice %5 {offsets = [24, 0], sizes = [8, 16], strides = [1, 1]} : vector<32x16xf32> to vector<8x16xf32>
    %88 = tpu.concatenate %86, %87 in 0 : vector<8x16xf32>, vector<8x16xf32> -> vector<16x16xf32>
    %cst_39 = arith.constant dense<0.000000e+00> : vector<16x80xf32>
    %89 = tpu.matmul %88, %85, %cst_39 {dimension_numbers = #tpu.dot_dimension_numbers<[1], [0], [0], [1], [0, 0, 1, 1], [], []>} : vector<16x16xf32>, vector<16x80xf32>, vector<16x80xf32> -> vector<16x80xf32>
    %90 = vector.extract_strided_slice %89 {offsets = [0, 0], sizes = [8, 80], strides = [1, 1]} : vector<16x80xf32> to vector<8x80xf32>
    %91 = vector.extract_strided_slice %89 {offsets = [8, 0], sizes = [8, 80], strides = [1, 1]} : vector<16x80xf32> to vector<8x80xf32>
    %92 = tpu.concatenate %45, %60, %75, %90 in 0 : vector<8x80xf32>, vector<8x80xf32>, vector<8x80xf32>, vector<8x80xf32> -> vector<32x80xf32>
    %93 = tpu.concatenate %46, %61, %76, %91 in 0 : vector<8x80xf32>, vector<8x80xf32>, vector<8x80xf32>, vector<8x80xf32> -> vector<32x80xf32>
    %c0_40 = arith.constant 0 : index
    %c0_41 = arith.constant 0 : index
    %94 = vector.load %arg11[%c0_40, %c0_41] : memref<32x32xf32, #tpu.memory_space<vmem>>, vector<32x32xf32>
    %cst_42 = arith.constant dense<0.000000e+00> : vector<32x16xf32>
    %95 = tpu.matmul %94, %1, %cst_42 {dimension_numbers = #tpu.dot_dimension_numbers<[1], [0], [0], [1], [0, 0, 1, 1], [], []>} : vector<32x32xf32>, vector<32x16xf32>, vector<32x16xf32> -> vector<32x16xf32>
    %c0_43 = arith.constant 0 : index
    %c0_44 = arith.constant 0 : index
    %96 = vector.load %arg12[%c0_43, %c0_44] : memref<32x1xf32, #tpu.memory_space<vmem>>, vector<32x1xf32>
    %97 = vector.broadcast %96 : vector<32x1xf32> to vector<32x16xf32>
    %98 = arith.addf %95, %97 : vector<32x16xf32>
    %c0_45 = arith.constant 0 : index
    %c0_46 = arith.constant 0 : index
    %99 = vector.load %arg13[%c0_45, %c0_46] : memref<32x32xf32, #tpu.memory_space<vmem>>, vector<32x32xf32>
    %cst_47 = arith.constant dense<0.000000e+00> : vector<32x80xf32>
    %100 = tpu.matmul %99, %92, %cst_47 {dimension_numbers = #tpu.dot_dimension_numbers<[1], [0], [0], [1], [0, 0, 1, 1], [], []>} : vector<32x32xf32>, vector<32x80xf32>, vector<32x80xf32> -> vector<32x80xf32>
    %c0_48 = arith.constant 0 : index
    %c0_49 = arith.constant 0 : index
    %101 = vector.load %arg14[%c0_48, %c0_49] : memref<32x1xf32, #tpu.memory_space<vmem>>, vector<32x1xf32>
    %102 = vector.broadcast %101 : vector<32x1xf32> to vector<32x80xf32>
    %103 = arith.addf %100, %102 : vector<32x80xf32>
    %c0_50 = arith.constant 0 : index
    %c0_51 = arith.constant 0 : index
    %104 = vector.load %arg15[%c0_50, %c0_51] : memref<32x32xf32, #tpu.memory_space<vmem>>, vector<32x32xf32>
    %cst_52 = arith.constant dense<0.000000e+00> : vector<32x80xf32>
    %105 = tpu.matmul %104, %93, %cst_52 {dimension_numbers = #tpu.dot_dimension_numbers<[1], [0], [0], [1], [0, 0, 1, 1], [], []>} : vector<32x32xf32>, vector<32x80xf32>, vector<32x80xf32> -> vector<32x80xf32>
    %c0_53 = arith.constant 0 : index
    %c0_54 = arith.constant 0 : index
    %106 = vector.load %arg16[%c0_53, %c0_54] : memref<32x1xf32, #tpu.memory_space<vmem>>, vector<32x1xf32>
    %107 = vector.broadcast %106 : vector<32x1xf32> to vector<32x80xf32>
    %108 = arith.addf %105, %107 : vector<32x80xf32>
    %109 = vector.extract_strided_slice %103 {offsets = [0, 0], sizes = [32, 16], strides = [1, 1]} : vector<32x80xf32> to vector<32x16xf32>
    %110 = arith.mulf %98, %109 : vector<32x16xf32>
    %111 = vector.shape_cast %110 : vector<32x16xf32> to vector<4x8x16xf32>
    %cst_55 = arith.constant dense<0.000000e+00> : vector<4x16xf32>
    %112 = vector.multi_reduction <add>, %111, %cst_55 [1] : vector<4x8x16xf32> to vector<4x16xf32>
    %113 = vector.extract_strided_slice %103 {offsets = [0, 16], sizes = [32, 16], strides = [1, 1]} : vector<32x80xf32> to vector<32x16xf32>
    %114 = arith.mulf %98, %113 : vector<32x16xf32>
    %115 = vector.shape_cast %114 : vector<32x16xf32> to vector<4x8x16xf32>
    %cst_56 = arith.constant dense<0.000000e+00> : vector<4x16xf32>
    %116 = vector.multi_reduction <add>, %115, %cst_56 [1] : vector<4x8x16xf32> to vector<4x16xf32>
    %117 = vector.extract_strided_slice %103 {offsets = [0, 32], sizes = [32, 16], strides = [1, 1]} : vector<32x80xf32> to vector<32x16xf32>
    %118 = arith.mulf %98, %117 : vector<32x16xf32>
    %119 = vector.shape_cast %118 : vector<32x16xf32> to vector<4x8x16xf32>
    %cst_57 = arith.constant dense<0.000000e+00> : vector<4x16xf32>
    %120 = vector.multi_reduction <add>, %119, %cst_57 [1] : vector<4x8x16xf32> to vector<4x16xf32>
    %121 = vector.extract_strided_slice %103 {offsets = [0, 48], sizes = [32, 16], strides = [1, 1]} : vector<32x80xf32> to vector<32x16xf32>
    %122 = arith.mulf %98, %121 : vector<32x16xf32>
    %123 = vector.shape_cast %122 : vector<32x16xf32> to vector<4x8x16xf32>
    %cst_58 = arith.constant dense<0.000000e+00> : vector<4x16xf32>
    %124 = vector.multi_reduction <add>, %123, %cst_58 [1] : vector<4x8x16xf32> to vector<4x16xf32>
    %125 = vector.extract_strided_slice %103 {offsets = [0, 64], sizes = [32, 16], strides = [1, 1]} : vector<32x80xf32> to vector<32x16xf32>
    %126 = arith.mulf %98, %125 : vector<32x16xf32>
    %127 = vector.shape_cast %126 : vector<32x16xf32> to vector<4x8x16xf32>
    %cst_59 = arith.constant dense<0.000000e+00> : vector<4x16xf32>
    %128 = vector.multi_reduction <add>, %127, %cst_59 [1] : vector<4x8x16xf32> to vector<4x16xf32>
    %129 = arith.maximumf %112, %116 : vector<4x16xf32>
    %130 = arith.maximumf %129, %120 : vector<4x16xf32>
    %131 = arith.maximumf %130, %124 : vector<4x16xf32>
    %132 = arith.maximumf %131, %128 : vector<4x16xf32>
    %133 = arith.subf %112, %132 : vector<4x16xf32>
    %134 = math.exp %133 : vector<4x16xf32>
    %135 = arith.subf %116, %132 : vector<4x16xf32>
    %136 = math.exp %135 : vector<4x16xf32>
    %137 = arith.subf %120, %132 : vector<4x16xf32>
    %138 = math.exp %137 : vector<4x16xf32>
    %139 = arith.subf %124, %132 : vector<4x16xf32>
    %140 = math.exp %139 : vector<4x16xf32>
    %141 = arith.subf %128, %132 : vector<4x16xf32>
    %142 = math.exp %141 : vector<4x16xf32>
    %143 = arith.addf %134, %136 : vector<4x16xf32>
    %144 = arith.addf %143, %138 : vector<4x16xf32>
    %145 = arith.addf %144, %140 : vector<4x16xf32>
    %146 = arith.addf %145, %142 : vector<4x16xf32>
    %147 = tpu.reciprocal %146 {approx = true} : vector<4x16xf32> -> vector<4x16xf32>
    %148 = arith.mulf %146, %147 : vector<4x16xf32>
    %cst_60 = arith.constant 2.000000e+00 : f32
    %149 = vector.broadcast %cst_60 : f32 to vector<4x16xf32>
    %150 = arith.subf %149, %148 : vector<4x16xf32>
    %151 = arith.mulf %147, %150 : vector<4x16xf32>
    %152 = vector.shape_cast %108 : vector<32x80xf32> to vector<4x8x80xf32>
    %153 = arith.mulf %134, %151 : vector<4x16xf32>
    %154 = vector.shape_cast %153 : vector<4x16xf32> to vector<4x1x16xf32>
    %155 = vector.extract_strided_slice %152 {offsets = [0, 0, 0], sizes = [4, 8, 16], strides = [1, 1, 1]} : vector<4x8x80xf32> to vector<4x8x16xf32>
    %156 = vector.broadcast %154 : vector<4x1x16xf32> to vector<4x8x16xf32>
    %157 = arith.mulf %156, %155 : vector<4x8x16xf32>
    %158 = arith.mulf %136, %151 : vector<4x16xf32>
    %159 = vector.shape_cast %158 : vector<4x16xf32> to vector<4x1x16xf32>
    %160 = vector.extract_strided_slice %152 {offsets = [0, 0, 16], sizes = [4, 8, 16], strides = [1, 1, 1]} : vector<4x8x80xf32> to vector<4x8x16xf32>
    %161 = vector.broadcast %159 : vector<4x1x16xf32> to vector<4x8x16xf32>
    %162 = arith.mulf %161, %160 : vector<4x8x16xf32>
    %163 = arith.addf %157, %162 : vector<4x8x16xf32>
    %164 = arith.mulf %138, %151 : vector<4x16xf32>
    %165 = vector.shape_cast %164 : vector<4x16xf32> to vector<4x1x16xf32>
    %166 = vector.extract_strided_slice %152 {offsets = [0, 0, 32], sizes = [4, 8, 16], strides = [1, 1, 1]} : vector<4x8x80xf32> to vector<4x8x16xf32>
    %167 = vector.broadcast %165 : vector<4x1x16xf32> to vector<4x8x16xf32>
    %168 = arith.mulf %167, %166 : vector<4x8x16xf32>
    %169 = arith.addf %163, %168 : vector<4x8x16xf32>
    %170 = arith.mulf %140, %151 : vector<4x16xf32>
    %171 = vector.shape_cast %170 : vector<4x16xf32> to vector<4x1x16xf32>
    %172 = vector.extract_strided_slice %152 {offsets = [0, 0, 48], sizes = [4, 8, 16], strides = [1, 1, 1]} : vector<4x8x80xf32> to vector<4x8x16xf32>
    %173 = vector.broadcast %171 : vector<4x1x16xf32> to vector<4x8x16xf32>
    %174 = arith.mulf %173, %172 : vector<4x8x16xf32>
    %175 = arith.addf %169, %174 : vector<4x8x16xf32>
    %176 = arith.mulf %142, %151 : vector<4x16xf32>
    %177 = vector.shape_cast %176 : vector<4x16xf32> to vector<4x1x16xf32>
    %178 = vector.extract_strided_slice %152 {offsets = [0, 0, 64], sizes = [4, 8, 16], strides = [1, 1, 1]} : vector<4x8x80xf32> to vector<4x8x16xf32>
    %179 = vector.broadcast %177 : vector<4x1x16xf32> to vector<4x8x16xf32>
    %180 = arith.mulf %179, %178 : vector<4x8x16xf32>
    %181 = arith.addf %175, %180 : vector<4x8x16xf32>
    %182 = vector.shape_cast %181 : vector<4x8x16xf32> to vector<32x16xf32>
    %c0_61 = arith.constant 0 : index
    %c0_62 = arith.constant 0 : index
    %183 = vector.load %arg17[%c0_61, %c0_62] : memref<32x32xf32, #tpu.memory_space<vmem>>, vector<32x32xf32>
    %cst_63 = arith.constant dense<0.000000e+00> : vector<32x16xf32>
    %184 = tpu.matmul %183, %182, %cst_63 {dimension_numbers = #tpu.dot_dimension_numbers<[1], [0], [0], [1], [0, 0, 1, 1], [], []>} : vector<32x32xf32>, vector<32x16xf32>, vector<32x16xf32> -> vector<32x16xf32>
    %c0_64 = arith.constant 0 : index
    %c0_65 = arith.constant 0 : index
    %185 = vector.load %arg18[%c0_64, %c0_65] : memref<32x1xf32, #tpu.memory_space<vmem>>, vector<32x1xf32>
    %186 = vector.broadcast %185 : vector<32x1xf32> to vector<32x16xf32>
    %187 = arith.addf %184, %186 : vector<32x16xf32>
    %c0_66 = arith.constant 0 : index
    %c0_67 = arith.constant 0 : index
    %c0_68 = arith.constant 0 : index
    %188 = vector.load %arg19[%c0_66, %c0_67, %c0_68] : memref<1x32x16xf32, #tpu.memory_space<vmem>>, vector<1x32x16xf32>
    %189 = vector.shape_cast %188 : vector<1x32x16xf32> to vector<32x16xf32>
    %190 = vector.shape_cast %187 : vector<32x16xf32> to vector<1x32x16xf32>
    tpu.vector_store %arg19[%c0_66, %c0_67, %c0_68], %190 {strides = array<i32>} : memref<1x32x16xf32, #tpu.memory_space<vmem>>, vector<1x32x16xf32>,
    return
  }
  func.func @transform_0(%arg0: i32) -> (i32, i32, i32) {
    %c0_i32 = arith.constant 0 : i32
    %c0_i32_0 = arith.constant 0 : i32
    %c0_i32_1 = arith.constant 0 : i32
    return %arg0, %c0_i32, %c0_i32_0 : i32, i32, i32
  }
  func.func @transform_1(%arg0: i32) -> (i32, i32, i32) {
    %c0_i32 = arith.constant 0 : i32
    %c0_i32_0 = arith.constant 0 : i32
    %c0_i32_1 = arith.constant 0 : i32
    return %arg0, %c0_i32, %c0_i32_0 : i32, i32, i32
  }
  func.func @transform_2(%arg0: i32) -> (i32, i32, i32) {
    %c0_i32 = arith.constant 0 : i32
    %c0_i32_0 = arith.constant 0 : i32
    %c0_i32_1 = arith.constant 0 : i32
    return %arg0, %c0_i32, %c0_i32_0 : i32, i32, i32
  }
  func.func @transform_3(%arg0: i32) -> (i32, i32, i32) {
    %c0_i32 = arith.constant 0 : i32
    %c0_i32_0 = arith.constant 0 : i32
    %c0_i32_1 = arith.constant 0 : i32
    return %arg0, %c0_i32, %c0_i32_0 : i32, i32, i32
  }
  func.func @transform_4(%arg0: i32) -> (i32, i32) {
    %c0_i32 = arith.constant 0 : i32
    %c0_i32_0 = arith.constant 0 : i32
    %c0_i32_1 = arith.constant 0 : i32
    return %c0_i32, %c0_i32_0 : i32, i32
  }
  func.func @transform_5(%arg0: i32) -> (i32, i32) {
    %c0_i32 = arith.constant 0 : i32
    %c0_i32_0 = arith.constant 0 : i32
    %c0_i32_1 = arith.constant 0 : i32
    return %c0_i32, %c0_i32_0 : i32, i32
  }
  func.func @transform_6(%arg0: i32) -> (i32, i32) {
    %c0_i32 = arith.constant 0 : i32
    %c0_i32_0 = arith.constant 0 : i32
    %c0_i32_1 = arith.constant 0 : i32
    return %c0_i32, %c0_i32_0 : i32, i32
  }
  func.func @transform_7(%arg0: i32) -> (i32, i32) {
    %c0_i32 = arith.constant 0 : i32
    %c0_i32_0 = arith.constant 0 : i32
    %c0_i32_1 = arith.constant 0 : i32
    return %c0_i32, %c0_i32_0 : i32, i32
  }
  func.func @transform_8(%arg0: i32) -> (i32, i32) {
    %c0_i32 = arith.constant 0 : i32
    %c0_i32_0 = arith.constant 0 : i32
    %c0_i32_1 = arith.constant 0 : i32
    return %c0_i32, %c0_i32_0 : i32, i32
  }
  func.func @transform_9(%arg0: i32) -> (i32, i32) {
    %c0_i32 = arith.constant 0 : i32
    %c0_i32_0 = arith.constant 0 : i32
    %c0_i32_1 = arith.constant 0 : i32
    return %c0_i32, %c0_i32_0 : i32, i32
  }
  func.func @transform_10(%arg0: i32) -> (i32, i32) {
    %c0_i32 = arith.constant 0 : i32
    %c0_i32_0 = arith.constant 0 : i32
    %c0_i32_1 = arith.constant 0 : i32
    return %c0_i32, %c0_i32_0 : i32, i32
  }
  func.func @transform_11(%arg0: i32) -> (i32, i32) {
    %c0_i32 = arith.constant 0 : i32
    %c0_i32_0 = arith.constant 0 : i32
    %c0_i32_1 = arith.constant 0 : i32
    return %c0_i32, %c0_i32_0 : i32, i32
  }
  func.func @transform_12(%arg0: i32) -> (i32, i32) {
    %c0_i32 = arith.constant 0 : i32
    %c0_i32_0 = arith.constant 0 : i32
    %c0_i32_1 = arith.constant 0 : i32
    return %c0_i32, %c0_i32_0 : i32, i32
  }
  func.func @transform_13(%arg0: i32) -> (i32, i32) {
    %c0_i32 = arith.constant 0 : i32
    %c0_i32_0 = arith.constant 0 : i32
    %c0_i32_1 = arith.constant 0 : i32
    return %c0_i32, %c0_i32_0 : i32, i32
  }
  func.func @transform_14(%arg0: i32) -> (i32, i32) {
    %c0_i32 = arith.constant 0 : i32
    %c0_i32_0 = arith.constant 0 : i32
    %c0_i32_1 = arith.constant 0 : i32
    return %c0_i32, %c0_i32_0 : i32, i32
  }
  func.func @transform_15(%arg0: i32) -> (i32, i32) {
    %c0_i32 = arith.constant 0 : i32
    %c0_i32_0 = arith.constant 0 : i32
    %c0_i32_1 = arith.constant 0 : i32
    return %c0_i32, %c0_i32_0 : i32, i32
  }
  func.func @transform_16(%arg0: i32) -> (i32, i32) {
    %c0_i32 = arith.constant 0 : i32
    %c0_i32_0 = arith.constant 0 : i32
    %c0_i32_1 = arith.constant 0 : i32
    return %c0_i32, %c0_i32_0 : i32, i32
  }
  func.func @transform_17(%arg0: i32) -> (i32, i32) {
    %c0_i32 = arith.constant 0 : i32
    %c0_i32_0 = arith.constant 0 : i32
    %c0_i32_1 = arith.constant 0 : i32
    return %c0_i32, %c0_i32_0 : i32, i32
  }
  func.func @transform_18(%arg0: i32) -> (i32, i32, i32) {
    %c0_i32 = arith.constant 0 : i32
    %c0_i32_0 = arith.constant 0 : i32
    %c0_i32_1 = arith.constant 0 : i32
    return %arg0, %c0_i32, %c0_i32_0 : i32, i32, i32
  }
}

</mosaic_0001>

<bundles_post_ra>
// kernel: tpu_custom_call.1
= control target key start
LH: loop header
LB: loop body
LE: loop exit
PB: predicated region body
PF: predicated region fallthrough
CT: control target
= control target key end

     0   :  { %s3127_s27 = smov 0   ;;  %s3681_s0 = inlined_call_operand.vmem [shape: f32[2,32,16], index: 0, kind: input, shape index: {}]   ;;  %s3682_s1 = inlined_call_operand.vmem [shape: f32[2,32,16], index: 1, kind: input, shape index: {}]   ;;  %s3683_s2 = inlined_call_operand.vmem [shape: f32[2,32,16], index: 2, kind: input, shape index: {}]   ;;  %s3684_s3 = inlined_call_operand.vmem [shape: f32[2,32,16], index: 3, kind: input, shape index: {}]   ;;  %s3685_s4 = inlined_call_operand.vmem [shape: f32[1,80], index: 4, kind: input, shape index: {}]   ;;  %s3686_s5 = inlined_call_operand.vmem [shape: f32[64,32], index: 5, kind: input, shape index: {}]   ;;  %s3687_s6 = inlined_call_operand.vmem [shape: f32[64,1], index: 6, kind: input, shape index: {}]   ;;  %s3688_s7 = inlined_call_operand.vmem [shape: f32[32,64], index: 7, kind: input, shape index: {}]   ;;  %s3689_s8 = inlined_call_operand.vmem [shape: f32[32,1], index: 8, kind: input, shape index: {}]   ;;  %s3690_s9 = inlined_call_operand.vmem [shape: f32[4,32], index: 9, kind: input, shape index: {}]   ;;  %s3691_s10 = inlined_call_operand.vmem [shape: f32[32,32], index: 10, kind: input, shape index: {}]   ;;  %s3692_s11 = inlined_call_operand.vmem [shape: f32[32,1], index: 11, kind: input, shape index: {}]   ;;  %s3693_s12 = inlined_call_operand.vmem [shape: f32[32,32], index: 12, kind: input, shape index: {}]   ;;  %s3694_s13 = inlined_call_operand.vmem [shape: f32[32,1], index: 13, kind: input, shape index: {}]   ;;  %s3695_s14 = inlined_call_operand.vmem [shape: f32[32,32], index: 14, kind: input, shape index: {}]   ;;  %s3696_s15 = inlined_call_operand.vmem [shape: f32[32,1], index: 15, kind: input, shape index: {}]   ;;  %s3697_s16 = inlined_call_operand.vmem [shape: f32[32,32], index: 16, kind: input, shape index: {}]   ;;  %s3698_s17 = inlined_call_operand.vmem [shape: f32[32,1], index: 17, kind: input, shape index: {}]   ;;  %s3699_s18 = inlined_call_operand.vmem [shape: f32[2,32,16], index: 18, kind: output, shape index: {}]  }
   0x1   :  { %3700 = sst [smem:[#allocation2_spill]] %s3681_s0 }
   0x2   :  { %3701 = sst [smem:[#allocation3_spill]] %s3682_s1 }
   0x3   :  { %3702 = sst [smem:[#allocation4_spill]] %s3683_s2 }
   0x4 LB: > { %s2577_s28 = sadd.s32 4294967295, %s3020_s27   ;;  %p2581_p0 = scmp.ge.s32.totalorder %s3020_s27, 1  ;;  %s3020_s27 = sphi %s3127_s27, %s28_s27  }
   0x5   : > { %p542_p1 = scmp.lt.s32.totalorder %s3020_s27, 3 }
   0x7   : > { %p543_p2 = pnand %p2581_p0, %p542_p1 }
   0x8   : > { %p611_p3 = scmp.lt.s32.totalorder (!%p543_p2), %s2577_s28, 1  ;;  %v653_v0 = vld [vmem:[%s3686_s5] sm:$0xff] (!%p543_p2)  ;;  %vm709_vm0 = vcmask (!%p543_p2), 261120   ;;  %v3022_v1 = vmov (!%p543_p2), 0   ;;  %v663_v3 = vld [vmem:[%s3687_s6 + $0x10] sm:$0xff] (!%p543_p2)  ;;  %v662_v4 = vld [vmem:[%s3687_s6 + $0x8] sm:$0xff] (!%p543_p2) }
   0x9   : > { %546 = sbr.rel (%p543_p2) target bundleno = 1833 (0x729), region = 92  ;;  %2729 = vmatprep.mubr.msk.f32.mxu0 (!%p543_p2), %vm709_vm0, %v653_v0  ;;  %2964 = vset.pattern.permute.xlu0 (!%p543_p2), %v3022_v1  ;;  %v661_v2 = vld [vmem:[%s3687_s6] sm:$0xff] (!%p543_p2)  ;;  %v664_v5 = vld [vmem:[%s3687_s6 + $0x18] sm:$0xff] (!%p543_p2)  ;;  %v666_v13 = vld [vmem:[%s3687_s6 + $0x28] sm:$0xff] (!%p543_p2)  ;;  %vm875_vm1 = vcmask (!%p543_p2), 523264   ;;  %vm3024_vm2 = vmmov (!%p543_p2), 0  }
   0xa   : > { %2965 = vset.pattern.permute.xlu1 (!%p543_p2), %v3022_v1  ;;  %671 = vperm.xlu0 (!%p543_p2), %2964, %v661_v2   ;;  %v665_v12 = vld [vmem:[%s3687_s6 + $0x20] sm:$0xff] (!%p543_p2)  ;;  %v667_v14 = vld [vmem:[%s3687_s6 + $0x30] sm:$0xff] (!%p543_p2)  ;;  %v668_v15 = vld [vmem:[%s3687_s6 + $0x38] sm:$0xff] (!%p543_p2)  ;;  %vm1068_vm6 = vcmask (!%p543_p2), 130048   ;;  %s3703_s19 = sld [smem:[#allocation3_spill]] (!%p543_p2)  ;;  %s3704_s2 = sld [smem:[#allocation4_spill]] (!%p543_p2) }
   0xb   : > { %681 = vperm.xlu1 (!%p543_p2), %2965, %v663_v3   ;;  %v654_v16 = vld [vmem:[%s3686_s5 + $0x8] sm:$0xff] (!%p543_p2)  ;;  %v655_v17 = vld [vmem:[%s3686_s5 + $0x10] sm:$0xff] (!%p543_p2)  ;;  %v851_v18 = vld [vmem:[%s3689_s8] sm:$0xff] (!%p543_p2)  ;;  %s3705_s26 = sld [smem:[#allocation2_spill]] (!%p543_p2)  ;;  %s3031_s30 = smov (!%p543_p2), 64  }
   0xc   : > { %v852_v19 = vld [vmem:[%s3689_s8 + $0x8] sm:$0xff] (!%p543_p2)  ;;  %v656_v20 = vld [vmem:[%s3686_s5 + $0x18] sm:$0xff] (!%p543_p2)  ;;  %v657_v21 = vld [vmem:[%s3686_s5 + $0x20] sm:$0xff] (!%p543_p2) }
   0xd   : > { %v853_v22 = vld [vmem:[%s3689_s8 + $0x10] sm:$0xff] (!%p543_p2)  ;;  %v854_v23 = vld [vmem:[%s3689_s8 + $0x18] sm:$0xff] (!%p543_p2)  ;;  %v658_v24 = vld [vmem:[%s3686_s5 + $0x28] sm:$0xff] (!%p543_p2) }
   0xe   : > { %676 = vperm.xlu0 (!%p543_p2), %2964, %v662_v4   ;;  %v659_v25 = vld [vmem:[%s3686_s5 + $0x30] sm:$0xff] (!%p543_p2)  ;;  %v1683_v26 = vld [vmem:[%s3694_s13] sm:$0xff] (!%p543_p2)  ;;  %v1684_v27 = vld [vmem:[%s3694_s13 + $0x8] sm:$0xff] (!%p543_p2) }
   0xf   : > { %686 = vperm.xlu1 (!%p543_p2), %2965, %v664_v5   ;;  %v660_v28 = vld [vmem:[%s3686_s5 + $0x38] sm:$0xff] (!%p543_p2)  ;;  %v1685_v29 = vld [vmem:[%s3694_s13 + $0x10] sm:$0xff] (!%p543_p2)  ;;  %v1558_v31 = vld [vmem:[%s3692_s11] sm:$0xff] (!%p543_p2) }
  0x10   : > { %s3707_s28 = smov (!%p611_p3, %s2577_s28), 1  ;;  %v1686_v30 = vld [vmem:[%s3694_s13 + $0x18] sm:$0xff]  ;;  %v1559_v32 = vld [vmem:[%s3692_s11 + $0x8] sm:$0xff]  ;;  %v1560_v33 = vld [vmem:[%s3692_s11 + $0x10] sm:$0xff] }
  0x11   : > { %s3145_s21 = sshll.u32 %s3707_s28, 5  ;;  %v1561_v34 = vld [vmem:[%s3692_s11 + $0x18] sm:$0xff]  ;;  %v1808_v35 = vld [vmem:[%s3696_s15] sm:$0xff]  ;;  %v1809_v36 = vld [vmem:[%s3696_s15 + $0x8] sm:$0xff]  ;;  %s3030_s28 = smov 80  }
  0x12   : > { %s630_s25 = scalar_lea.vmem %s3684_s3, %s3145_s21  ;;  %691 = vperm.xlu0 %2964, %v665_v12   ;;  %v1810_v37 = vld [vmem:[%s3696_s15 + $0x10] sm:$0xff]  ;;  %v1811_v38 = vld [vmem:[%s3696_s15 + $0x18] sm:$0xff]  ;;  %v847_v39 = vld [vmem:[%s3688_s7] sm:$0xff]  ;;  %s3285_s1 = scalar_lea.vmem %s3703_s19, %s3145_s21 }
  0x13   : > { %v648_v6 = vld [vmem:[%s630_s25] sm:$0xff]  ;;  %v649_v7 = vld [vmem:[%s630_s25 + $0x8] sm:$0xff]  ;;  %v650_v8 = vld [vmem:[%s630_s25 + $0x10] sm:$0xff]  ;;  %696 = vperm.xlu1 %2965, %v666_v13   ;;  %2757 = vmatprep.mubr.msk.f32.mxu1 %vm875_vm1, %v847_v39  ;;  %s3308_s23 = scalar_lea.vmem %s3704_s2, %s3145_s21  ;;  %s615_s29 = scalar_lea.vmem %s3705_s26, %s3145_s21 }
  0x14   : > { %v2865_v9 = vpack.c.bf16 %v649_v7, %v648_v6  ;;  %v651_v10 = vld [vmem:[%s630_s25 + $0x18] sm:$0xff]  ;;  %v848_v12 = vld [vmem:[%s3688_s7 + $0x8] sm:$0xff]  ;;  %v849_v13 = vld [vmem:[%s3688_s7 + $0x10] sm:$0xff]  ;;  %s3028_s26 = smov 112   ;;  %s635_s2 = scalar_lea.vmem %s3699_s18, %s3145_s21 }
  0x15   : > { %v2869_v11 = vpack.c.bf16 %v651_v10, %v650_v8 }
  0x16   : > { %2866 = vmatprep.subr.bf16.mxu0 %v2865_v9  ;;  %701 = vperm.xlu0 %2964, %v667_v14   ;;  %v850_v14 = vld [vmem:[%s3688_s7 + $0x18] sm:$0xff] }
  0x17   : > { %2868 = vmatpush3.bf16.msra.mxu0 %v2865_v9  ;;  %706 = vperm.xlu1 %2965, %v668_v15   ;;  %v3023_v15 = vmov 0.0|0.0  }
  0x18   : > { %2870 = vmatprep.subr.bf16.mxu0 %v2869_v11 }
  0x1a   : > { %857 = vperm.xlu0 %2964, %v851_v18  }
  0x1b   : > { %2872 = vmatpush3.bf16.msra.mxu0 %v2869_v11  ;;  %862 = vperm.xlu1 %2965, %v852_v19   ;;  %v3264_v19 = vld [vmem:[%s3685_s4] sm:$0x1] }
  0x1c   : > { %2889 = vmatprep.subr.bf16.mxu0 %v3023_v15 }
  0x1e   : > { %2730 = vmatmul.mubr.msk.f32.vlgmr.msra.gmra.mrb[0].mxu0 %vm709_vm0, %v654_v16  ;;  %867 = vperm.xlu0 %2964, %v853_v22   ;;  %v3025_v16 = vmov 0.0  }
  0x1f   : > { %2732 = vmatprep.mubr.msk.f32.mxu0 %vm709_vm0, %v655_v17  ;;  %872 = vperm.xlu1 %2965, %v854_v23   ;;  %v1051_v17 = vlaneseq }
  0x21   : > { %v1052_v18 = vshrl.u32 %v1051_v17, 7 }
  0x22   : > { %2733 = vmatmul.mubr.msk.f32.gmra.mrb[2].mxu0 %vm709_vm0, %v656_v20  ;;  %1689 = vperm.xlu0 %2964, %v1683_v26  }
  0x23   : > { %2735 = vmatprep.mubr.msk.f32.mxu0 %vm709_vm0, %v657_v21  ;;  %1694 = vperm.xlu1 %2965, %v1684_v27   ;;  %v1053_v20 = vadd.s32 8, %v1052_v18  ;;  %v3266_v21 = vcvt.s32.f32 %v1052_v18  ;;  %v3268_v22 = vsub.s32 0, %v1052_v18 }
  0x25   : > { %v3270_v23 = vcvt.s32.f32 %v1053_v20 }
  0x26   : > { %2736 = vmatmul.mubr.msk.f32.gmra.mrb[4].mxu0 %vm709_vm0, %v658_v24  ;;  %1699 = vperm.xlu0 %2964, %v1685_v29   ;;  %v1060_v24 = vrot.slane %v3264_v19, %v3268_v22 }
  0x27   : > { %2738 = vmatprep.mubr.msk.f32.mxu0 %vm709_vm0, %v659_v25  ;;  %1704 = vperm.xlu1 %2965, %v1686_v30   ;;  %v3026_v25 = vmov 1.0|1.0  }
  0x28   : > { %vm1062_vm3 = vcmp.eq.f32.partialorder %v3266_v21, %v1060_v24  ;;  %vm1063_vm4 = vcmp.eq.f32.partialorder %v3270_v23, %v1060_v24 }
  0x29   : > { %vm2896_vm5 = vmpackc.low %vm1063_vm4, %vm1062_vm3 }
  0x2a   : > { %2739 = vmatmul.mubr.msk.f32.gmra.mrb[6].mxu0 %vm709_vm0, %v660_v28  ;;  %1564 = vperm.xlu0 %2964, %v1558_v31  }
  0x2b   : > { %1569 = vperm.xlu1 %2965, %v1559_v32   ;;  %2771 = vmatprep.mubr.msk.f32.mxu0 %vm3024_vm2, %v3025_v16 }
  0x2e   : > { %1574 = vperm.xlu0 %2964, %v1560_v33  }
  0x2f   : > { %1579 = vperm.xlu1 %2965, %v1561_v34  }
  0x32   : > { %1814 = vperm.xlu0 %2964, %v1808_v35  }
  0x33   : > { %1819 = vperm.xlu1 %2965, %v1809_v36  }
  0x36   : > { %1824 = vperm.xlu0 %2964, %v1810_v37  }
  0x37   : > { %1829 = vperm.xlu1 %2965, %v1811_v38  }
  0x89   : > { %v672_v40 = vpop.permute.xlu0 %671 }
  0x8a   : > { %v682_v41 = vpop.permute.xlu1 %681 }
  0x8d   : > { %v677_v42 = vpop.permute.xlu0 %676 }
  0x8e   : > { %v687_v43 = vpop.permute.xlu1 %686 }
  0x91   : > { %v692_v56 = vpop.permute.xlu0 %691 }
  0x92   : > { %v697_v53 = vpop.permute.xlu1 %696 }
  0x95   : > { %v702_v4 = vpop.permute.xlu0 %701 }
  0x96   : > { %v707_v1 = vpop.permute.xlu1 %706 }
  0x99   : > { %v858_v27 = vpop.permute.xlu0 %857 }
  0x9a   : > { %v863_v26 = vpop.permute.xlu1 %862 }
  0x9d   : > { %v868_v36 = vpop.permute.xlu0 %867 }
  0x9e   : > { %v873_v33 = vpop.permute.xlu1 %872 }
  0xf1   : > { %v2731_v44 = vpop.f32.mrb[0].mxu0 }
  0xf2   : > { %v806_v45 = vadd.f32 %v2731_v44, %v677_v42  ;;  %v800_v46 = vpop.f32.mrb[1].mxu0  ;;  %v977_v44 = vld [vmem:[%s3690_s9] sm:$0xf] }
  0xf3   : > { %v801_v47 = vadd.f32 %v800_v46, %v672_v40 }
  0xf4   : > { %v840_v48 = vmax.f32 %v806_v45, 0.0 }
  0xf5   : > { %v839_v49 = vmax.f32 %v801_v47, 0.0  ;;  %v2734_v50 = vpop.f32.mrb[2].mxu0  ;;  %v640_v47 = vld [vmem:[%s3285_s1] sm:$0xff] }
  0xf6   : > { %v816_v51 = vadd.f32 %v2734_v50, %v687_v43  ;;  %v810_v52 = vpop.f32.mrb[3].mxu0 }
  0xf7   : > { %v811_v54 = vadd.f32 %v810_v52, %v682_v41  ;;  %v2873_v55 = vpack.c.bf16 %v840_v48, %v839_v49  ;;  %v641_v48 = vld [vmem:[%s3285_s1 + $0x8] sm:$0xff]  ;;  %v3027_v49 = vmov 1966171168  }
  0xf8   : > { %v842_v57 = vmax.f32 %v816_v51, 0.0  ;;  %v1240_v50 = vunpack.c.l.s4 %v3027_v49  ;;  %v646_v49 = vld [vmem:[%s3308_s23 + $0x10] sm:$0xff] }
  0xf9   : > { %v841_v58 = vmax.f32 %v811_v54, 0.0  ;;  %v2737_v59 = vpop.f32.mrb[4].mxu0  ;;  %2874 = vmatprep.subr.bf16.mxu1 %v2873_v55 }
  0xfa   : > { %v826_v60 = vadd.f32 %v2737_v59, %v697_v53  ;;  %v820_v61 = vpop.f32.mrb[5].mxu0  ;;  %2876 = vmatpush3.bf16.msra.mxu1 %v2873_v55  ;;  %v1241_v51 = vunpack.c.0.s8 %v1240_v50  ;;  %v643_v50 = vld [vmem:[%s3285_s1 + $0x18] sm:$0xff] }
  0xfb   : > { %v2877_v62 = vpack.c.bf16 %v842_v57, %v841_v58  ;;  %v821_v63 = vadd.f32 %v820_v61, %v692_v56 }
  0xfc   : > { %v844_v0 = vmax.f32 %v826_v60, 0.0  ;;  %v1244_v52 = vsub.s32 %v1241_v51, %v1052_v18 }
  0xfd   : > { %v843_v2 = vmax.f32 %v821_v63, 0.0  ;;  %v2740_v3 = vpop.f32.mrb[6].mxu0  ;;  %2878 = vmatprep.subr.bf16.mxu1 %v2877_v62 }
  0xfe   : > { %v836_v5 = vadd.f32 %v2740_v3, %v707_v1  ;;  %v830_v6 = vpop.f32.mrb[7].mxu0  ;;  %2880 = vmatpush3.bf16.msra.mxu1 %v2877_v62 }
  0xff   : > { %v2881_v7 = vpack.c.bf16 %v844_v0, %v843_v2  ;;  %v831_v8 = vadd.f32 %v830_v6, %v702_v4 }
 0x100   : > { %v846_v9 = vmax.f32 %v836_v5, 0.0 }
 0x101   : > { %v845_v10 = vmax.f32 %v831_v8, 0.0  ;;  %2882 = vmatprep.subr.bf16.mxu1 %v2881_v7 }
 0x102   : > { %2884 = vmatpush3.bf16.msra.mxu1 %v2881_v7 }
 0x103   : > { %v2885_v11 = vpack.c.bf16 %v846_v9, %v845_v10 }
 0x105   : > { %2886 = vmatprep.subr.bf16.mxu1 %v2885_v11 }
 0x106   : > { %2888 = vmatpush3.bf16.msra.mxu1 %v2885_v11 }
 0x107   : > { %2895 = vmatprep.subr.bf16.mxu1 %v3023_v15 }
 0x109   : > { %2758 = vmatmul.mubr.msk.f32.vlgmr.msra.gmra.mrb[0].mxu1 %vm875_vm1, %v848_v12 }
 0x10a   : > { %2760 = vmatprep.mubr.msk.f32.mxu1 %vm875_vm1, %v849_v13  ;;  %2897 = vmatpush3.bf16.msk.msra.mxu1 %vm2896_vm5, %v3026_v25 }
 0x10d   : > { %2761 = vmatmul.mubr.msk.f32.gmra.mrb[2].mxu1 %vm875_vm1, %v850_v14 }
 0x10e   : > { %2778 = vmatprep.mubr.msk.f32.mxu1 %vm3024_vm2, %v3025_v16 }
 0x1dc   : > { %v2759_v28 = vpop.f32.mrb[0].mxu1 }
 0x1dd   : > { %v960_v29 = vadd.f32 %v2759_v28, %v863_v26  ;;  %v954_v30 = vpop.f32.mrb[1].mxu1 }
 0x1de   : > { %v955_v31 = vadd.f32 %v954_v30, %v858_v27 }
 0x1df   : > { %v974_v32 = vmax.f32 %v960_v29, 0.0  ;;  %v644_v29 = vld [vmem:[%s3308_s23] sm:$0xff] }
 0x1e0   : > { %v973_v34 = vmax.f32 %v955_v31, 0.0  ;;  %v2762_v35 = vpop.f32.mrb[2].mxu1 }
 0x1e1   : > { %v970_v37 = vadd.f32 %v2762_v35, %v873_v33  ;;  %v964_v38 = vpop.f32.mrb[3].mxu1  ;;  %v642_v35 = vld [vmem:[%s3285_s1 + $0x10] sm:$0xff] }
 0x1e2   : > { %v2890_v39 = vpack.c.bf16 %v974_v32, %v973_v34  ;;  %v965_v40 = vadd.f32 %v964_v38, %v868_v36  ;;  %v636_v36 = vld [vmem:[%s615_s29] sm:$0xff] }
 0x1e3   : > { %v976_v41 = vmax.f32 %v970_v37, 0.0 }
 0x1e4   : > { %v975_v42 = vmax.f32 %v965_v40, 0.0  ;;  %2891 = vmatpush3.bf16.msra.mxu0 %v2890_v39 }
 0x1e5   : > { %2892 = vmatprep.subr.bf16.mxu0 %v3023_v15 }
 0x1e6   : > { %v2893_v43 = vpack.c.bf16 %v976_v41, %v975_v42 }
 0x1e8   : > { %2894 = vmatpush3.bf16.msra.mxu0 %v2893_v43 }
 0x1eb   : > { %2772 = vmatmul.mubr.msk.f32.vlgmr.msra.gmra.mrb[8].mxu0 %vm709_vm0, %v977_v44 }
 0x1ec   : > { %2785 = vmatprep.mubr.msk.f32.mxu0 %vm1068_vm6, %v640_v47  ;;  %v645_v47 = vld [vmem:[%s3308_s23 + $0x8] sm:$0xff] }
 0x2be   : > { %v1047_v45 = vpop.f32.mrb[8].mxu0 }
 0x2bf   : > { %2779 = vmatmul.mubr.msk.f32.vlgmr.msra.gmra.mrb[4].mxu1 %vm1068_vm6, %v1047_v45  ;;  %v2773_v46 = vpop.f32.mrb[9].mxu0  ;;  %v638_v45 = vld [vmem:[%s615_s29 + $0x10] sm:$0xff] }
 0x2c0   : > { %2792 = vmatprep.mubr.msk.f32.mxu1 %vm1068_vm6, %v641_v48  ;;  %v639_v46 = vld [vmem:[%s615_s29 + $0x18] sm:$0xff] }
 0x2c1   : > { %v2918_v51 = vpack.c.bf16 %v639_v46, %v638_v45 }
 0x392   : > { %v1138_v53 = vpop.f32.mrb[4].mxu1 }
 0x393   : > { %v1142_v54 = vadd.f32 %v1138_v53, %v3264_v19  ;;  %v1245_v55 = vrot.slane %v1138_v53, %v1244_v52  ;;  %v2780_v56 = vpop.f32.mrb[5].mxu1  ;;  %v647_v53 = vld [vmem:[%s3308_s23 + $0x18] sm:$0xff] }
 0x394   : > { %v1557_v56 = vld [vmem:[%s3691_s10 + $0x18] sm:$0xff] }
 0x395   : > { %v1147_v57 = vrot.slane %v1142_v54, %v3268_v22  ;;  %v1246_v58 = vcombine.high %v1245_v55, %v1245_v55  ;;  %v1253_v59 = vrot.slane %v1245_v55, %v1244_v52  ;;  %v1555_v54 = vld [vmem:[%s3691_s10 + $0x8] sm:$0xff]  ;;  %v1556_v55 = vld [vmem:[%s3691_s10 + $0x10] sm:$0xff] }
 0x397   : > { %v1149_v60 = vsub.f32 %v1147_v57, %v3266_v21  ;;  %v1150_v61 = vsub.f32 %v1147_v57, %v3270_v23  ;;  %v1260_v62 = vrot.slane %v1246_v58, %v1244_v52  ;;  %v1358_v63 = vcombine.high %v1253_v59, %v1253_v59  ;;  %v1554_v52 = vld [vmem:[%s3691_s10] sm:$0xff] }
 0x398   : > { %v1804_v57 = vld [vmem:[%s3695_s14] sm:$0xff] }
 0x399   : > { %v1151_v0 = vand.u32 2147483647, %v1149_v60  ;;  %v1152_v1 = vand.u32 2147483647, %v1150_v61  ;;  %v1262_v2 = vadd.f32 %v1260_v62, %v3264_v19  ;;  %v1360_v3 = vadd.f32 %v1358_v63, %v3264_v19  ;;  %v1679_v58 = vld [vmem:[%s3693_s12] sm:$0xff] }
 0x39a   : > { %v1456_v4 = vcombine.high %v1260_v62, %v1260_v62 }
 0x39b   : > { %v1365_v5 = vrot.slane %v1360_v3, %v3268_v22  ;;  %v1153_v6 = vsub.f32 1.0, %v1151_v0  ;;  %v1154_v7 = vsub.f32 1.0, %v1152_v1  ;;  %v1267_v8 = vrot.slane %v1262_v2, %v3268_v22 }
 0x39c   : > { %v1458_v9 = vadd.f32 %v1456_v4, %v3264_v19 }
 0x39d   : > { %v1155_v10 = vmax.f32 %v1153_v6, 0.0  ;;  %v1156_v11 = vmax.f32 %v1154_v7, 0.0  ;;  %v1269_v12 = vsub.f32 %v1267_v8, %v3266_v21  ;;  %v1270_v13 = vsub.f32 %v1267_v8, %v3270_v23  ;;  %v1805_v7 = vld [vmem:[%s3695_s14 + $0x8] sm:$0xff] }
 0x39e   : > { %v1367_v14 = vsub.f32 %v1365_v5, %v3266_v21  ;;  %v1368_v15 = vsub.f32 %v1365_v5, %v3270_v23  ;;  %v1463_v16 = vrot.slane %v1458_v9, %v3268_v22  ;;  %v1680_v9 = vld [vmem:[%s3693_s12 + $0x8] sm:$0xff] }
 0x39f   : > { %v2898_v17 = vpack.c.bf16 %v1156_v11, %v1155_v10  ;;  %v1271_v18 = vand.u32 2147483647, %v1269_v12  ;;  %v1272_v19 = vand.u32 2147483647, %v1270_v13  ;;  %v1806_v10 = vld [vmem:[%s3695_s14 + $0x10] sm:$0xff]  ;;  %v1807_v13 = vld [vmem:[%s3695_s14 + $0x18] sm:$0xff] }
 0x3a0   : > { %v1369_v20 = vand.u32 2147483647, %v1367_v14  ;;  %v1370_v24 = vand.u32 2147483647, %v1368_v15  ;;  %v1465_v25 = vsub.f32 %v1463_v16, %v3266_v21  ;;  %v1466_v26 = vsub.f32 %v1463_v16, %v3270_v23  ;;  %v637_v21 = vld [vmem:[%s615_s29 + $0x8] sm:$0xff]  ;;  %v1681_v12 = vld [vmem:[%s3693_s12 + $0x10] sm:$0xff] }
 0x3a1   : > { %2899 = vmatprep.subr.bf16.mxu0 %v2898_v17  ;;  %v1273_v27 = vsub.f32 1.0, %v1271_v18  ;;  %v1274_v28 = vsub.f32 1.0, %v1272_v19  ;;  %v2914_v44 = vpack.c.bf16 %v637_v21, %v636_v36  ;;  %v1682_v15 = vld [vmem:[%s3693_s12 + $0x18] sm:$0xff]  ;;  %v1690_v18 = vpop.permute.xlu0 %1689  ;;  %s3029_s29 = smov 96  }
 0x3a2   : > { %2901 = vmatpush3.bf16.msra.mxu0 %v2898_v17  ;;  %v1371_v22 = vsub.f32 1.0, %v1369_v20  ;;  %v1372_v30 = vsub.f32 1.0, %v1370_v24  ;;  %v1467_v31 = vand.u32 2147483647, %v1465_v25  ;;  %v1468_v32 = vand.u32 2147483647, %v1466_v26  ;;  %v1695_v17 = vpop.permute.xlu1 %1694 }
 0x3a3   : > { %v1275_v33 = vmax.f32 %v1273_v27, 0.0  ;;  %v1276_v34 = vmax.f32 %v1274_v28, 0.0 }
 0x3a4   : > { %v1373_v37 = vmax.f32 %v1371_v22, 0.0  ;;  %v1374_v23 = vmax.f32 %v1372_v30, 0.0  ;;  %v1469_v38 = vsub.f32 1.0, %v1467_v31  ;;  %v1470_v39 = vsub.f32 1.0, %v1468_v32 }
 0x3a5   : > { %v2902_v40 = vpack.c.bf16 %v1276_v34, %v1275_v33  ;;  %2786 = vmatmul.mubr.msk.f32.vlgmr.msra.gmra.mrb[10].mxu0 %vm1068_vm6, %v644_v29  ;;  %v1700_v20 = vpop.permute.xlu0 %1699 }
 0x3a6   : > { %v2906_v41 = vpack.c.bf16 %v1374_v23, %v1373_v37  ;;  %2799 = vmatprep.mubr.msk.f32.mxu0 %vm1068_vm6, %v642_v35  ;;  %v1471_v42 = vmax.f32 %v1469_v38, 0.0  ;;  %v1472_v43 = vmax.f32 %v1470_v39, 0.0  ;;  %v1705_v19 = vpop.permute.xlu1 %1704 }
 0x3a7   : > { %2903 = vmatprep.subr.bf16.mxu1 %v2902_v40 }
 0x3a8   : > { %2907 = vmatprep.subr.bf16.mxu0 %v2906_v41  ;;  %2905 = vmatpush3.bf16.msra.mxu1 %v2902_v40  ;;  %v2910_v48 = vpack.c.bf16 %v1472_v43, %v1471_v42 }
 0x3a9   : > { %2909 = vmatpush3.bf16.msra.mxu0 %v2906_v41  ;;  %v1565_v25 = vpop.permute.xlu0 %1564 }
 0x3aa   : > { %2911 = vmatprep.subr.bf16.mxu1 %v2910_v48  ;;  %2915 = vmatprep.subr.bf16.mxu0 %v2914_v44  ;;  %v1570_v24 = vpop.permute.xlu1 %1569 }
 0x3ab   : > { %2793 = vmatmul.mubr.msk.f32.vlgmr.msra.gmra.mrb[6].mxu1 %vm1068_vm6, %v645_v47 }
 0x3ac   : > { %2800 = vmatmul.mubr.msk.f32.vlgmr.msra.gmra.mrb[12].mxu0 %vm1068_vm6, %v646_v49  ;;  %2913 = vmatpush3.bf16.msra.mxu1 %v2910_v48 }
 0x3ad   : > { %2917 = vmatpush3.bf16.msra.mxu0 %v2914_v44  ;;  %2806 = vmatprep.mubr.msk.f32.mxu1 %vm1068_vm6, %v643_v50  ;;  %v1575_v23 = vpop.permute.xlu0 %1574 }
 0x3ae   : > { %2919 = vmatprep.subr.bf16.mxu0 %v2918_v51  ;;  %2817 = vmatprep.mubr.msk.f32.mxu0 %vm709_vm0, %v1554_v52  ;;  %v1580_v33 = vpop.permute.xlu1 %1579 }
 0x3af   : > { %2807 = vmatmul.mubr.msk.f32.vlgmr.msra.gmra.mrb[8].mxu1 %vm1068_vm6, %v647_v53  ;;  %v2362_v53 = vld [vmem:[%s3698_s17 + $0x8] sm:$0xff] }
 0x3b0   : > { %2831 = vmatprep.mubr.msk.f32.mxu1 %vm709_vm0, %v1679_v58 }
 0x3b1   : > { %2921 = vmatpush3.bf16.msra.mxu0 %v2918_v51  ;;  %v1815_v46 = vpop.permute.xlu0 %1814 }
 0x3b2   : > { %v1820_v45 = vpop.permute.xlu1 %1819 }
 0x3b4   : > { %2818 = vmatmul.mubr.msk.f32.vlgmr.msra.gmra.mrb[14].mxu0 %vm709_vm0, %v1555_v54  ;;  %v2361_v54 = vld [vmem:[%s3698_s17] sm:$0xff] }
 0x3b5   : > { %2820 = vmatprep.mubr.msk.f32.mxu0 %vm709_vm0, %v1556_v55  ;;  %v1825_v50 = vpop.permute.xlu0 %1824  ;;  %v2364_v55 = vld [vmem:[%s3698_s17 + $0x18] sm:$0xff] }
 0x3b6   : > { %v1830_v49 = vpop.permute.xlu1 %1829 }
 0x3b8   : > { %2821 = vmatmul.mubr.msk.f32.gmra.mrb[16].mxu0 %vm709_vm0, %v1557_v56  ;;  %v2363_v56 = vld [vmem:[%s3698_s17 + $0x10] sm:$0xff] }
 0x3b9   : > { %2845 = vmatprep.mubr.msk.f32.mxu0 %vm709_vm0, %v1804_v57 }
 0x478   : > { %v2787_v59 = vpop.f32.mrb[10].mxu0 }
 0x479   : > { %v1229_v60 = vpop.f32.mrb[11].mxu0 }
 0x47e   : > { %v2794_v61 = vpop.f32.mrb[6].mxu1 }
 0x47f   : > { %v2930_v62 = vpack.c.bf16 %v2794_v61, %v2787_v59  ;;  %v1349_v63 = vpop.f32.mrb[7].mxu1  ;;  %v2801_v0 = vpop.f32.mrb[12].mxu0 }
 0x480   : > { %v2922_v1 = vpack.c.bf16 %v1349_v63, %v1229_v60  ;;  %v1447_v2 = vpop.f32.mrb[13].mxu0 }
 0x481   : > { %2931 = vmatprep.subr.bf16.mxu0 %v2930_v62 }
 0x482   : > { %v2808_v3 = vpop.f32.mrb[8].mxu1  ;;  %2923 = vmatprep.subr.bf16.mxu1 %v2922_v1  ;;  %2933 = vmatpush3.bf16.msra.mxu0 %v2930_v62  ;;  %v2357_v62 = vld [vmem:[%s3697_s16] sm:$0xff] }
 0x483   : > { %v2934_v4 = vpack.c.bf16 %v2808_v3, %v2801_v0  ;;  %v1545_v5 = vpop.f32.mrb[9].mxu1  ;;  %2925 = vmatpush3.bf16.msra.mxu1 %v2922_v1 }
 0x484   : > { %v2926_v6 = vpack.c.bf16 %v1545_v5, %v1447_v2 }
 0x485   : > { %2935 = vmatprep.subr.bf16.mxu0 %v2934_v4 }
 0x486   : > { %2927 = vmatprep.subr.bf16.mxu1 %v2926_v6  ;;  %2937 = vmatpush3.bf16.msra.mxu0 %v2934_v4 }
 0x487   : > { %v2819_v8 = vpop.f32.mrb[14].mxu0  ;;  %2929 = vmatpush3.bf16.msra.mxu1 %v2926_v6 }
 0x488   : > { %v1660_v11 = vpop.f32.mrb[15].mxu0  ;;  %v3377_v29 = vadd.f32 %v2819_v8, %v1570_v24 }
 0x489   : > { %2846 = vmatmul.mubr.msk.f32.vlgmr.msra.gmra.mrb[18].mxu0 %vm709_vm0, %v1805_v7  ;;  %v3379_v31 = vadd.f32 %v1660_v11, %v1565_v25 }
 0x48a   : > { %2832 = vmatmul.mubr.msk.f32.vlgmr.msra.gmra.mrb[10].mxu1 %vm709_vm0, %v1680_v9  ;;  %2848 = vmatprep.mubr.msk.f32.mxu0 %vm709_vm0, %v1806_v10 }
 0x48b   : > { %v2822_v14 = vpop.f32.mrb[16].mxu0  ;;  %2834 = vmatprep.mubr.msk.f32.mxu1 %vm709_vm0, %v1681_v12 }
 0x48c   : > { %v1670_v16 = vpop.f32.mrb[17].mxu0  ;;  %v3387_v38 = vadd.f32 %v2822_v14, %v1580_v33 }
 0x48d   : > { %2849 = vmatmul.mubr.msk.f32.gmra.mrb[20].mxu0 %vm709_vm0, %v1807_v13  ;;  %v3389_v41 = vadd.f32 %v1670_v16, %v1575_v23 }
 0x48e   : > { %2835 = vmatmul.mubr.msk.f32.gmra.mrb[12].mxu1 %vm709_vm0, %v1682_v15 }
 0x48f   : > { %2859 = vmatprep.mubr.msk.f32.mxu1 %vm709_vm0, %v2357_v62 }
 0x55c   : > { %v2847_v26 = vpop.f32.mrb[18].mxu0 }
 0x55d   : > { %v2833_v27 = vpop.f32.mrb[10].mxu1  ;;  %v1910_v28 = vpop.f32.mrb[19].mxu0  ;;  %v3407_v47 = vadd.f32 %v2847_v26, %v1820_v45 }
 0x55e   : > { %v1791_v22 = vadd.f32 %v2833_v27, %v1695_v17  ;;  %v1785_v30 = vpop.f32.mrb[11].mxu1  ;;  %v3409_v48 = vadd.f32 %v1910_v28, %v1815_v46 }
 0x55f   : > { %v1786_v32 = vadd.f32 %v1785_v30, %v1690_v18 }
 0x560   : > { %v3382_v34 = vmul.f32 %v1791_v22, %v3377_v29  ;;  %1967 = vrot.lane.b32.xlu1 %v1791_v22, %s3028_s26  ;;  %v2850_v35 = vpop.f32.mrb[20].mxu0 }
 0x561   : > { %v1929_v36 = vmul.f32 %v1786_v32, %v3379_v31  ;;  %v2836_v21 = vpop.f32.mrb[12].mxu1  ;;  %1965 = vrot.lane.b32.xlu0 %v1786_v32, %s3028_s26  ;;  %v1920_v37 = vpop.f32.mrb[21].mxu0  ;;  %v3419_v51 = vadd.f32 %v2850_v35, %v1830_v49 }
 0x562   : > { %v1801_v39 = vadd.f32 %v2836_v21, %v1705_v19  ;;  %v1795_v40 = vpop.f32.mrb[13].mxu1  ;;  %v3421_v52 = vadd.f32 %v1920_v37, %v1825_v50  ;;  %v1940_v57 = vsel %vm1068_vm6, %v3382_v34, 0.0 }
 0x563   : > { %v1796_v42 = vadd.f32 %v1795_v40, %v1700_v20  ;;  %v1933_v58 = vsel %vm1068_vm6, %v1929_v36, 0.0  ;;  %v1941_v59 = vrot.slane %v1940_v57, 4 }
 0x564   : > { %v1932_v43 = vmul.f32 %v1801_v39, %v3387_v38  ;;  %2011 = vrot.lane.b32.xlu1 %v1791_v22, %s3029_s29  ;;  %v1934_v60 = vrot.slane %v1933_v58, 4 }
 0x565   : > { %v1931_v44 = vmul.f32 %v1796_v42, %v3389_v41  ;;  %2009 = vrot.lane.b32.xlu0 %v1786_v32, %s3029_s29  ;;  %v1942_v61 = vadd.f32 %v1941_v59, %v1940_v57 }
 0x566   : > { %v1954_v63 = vsel %vm1068_vm6, %v1932_v43, 0.0  ;;  %v1935_v0 = vadd.f32 %v1934_v60, %v1933_v58 }
 0x567   : > { %v1947_v1 = vsel %vm1068_vm6, %v1931_v44, 0.0  ;;  %v1943_v2 = vrot.slane %v1942_v61, 2  ;;  %v1955_v3 = vrot.slane %v1954_v63, 4 }
 0x568   : > { %2055 = vrot.lane.b32.xlu1 %v1791_v22, %s3030_s28  ;;  %v1936_v4 = vrot.slane %v1935_v0, 2  ;;  %v1948_v5 = vrot.slane %v1947_v1, 4 }
 0x569   : > { %2053 = vrot.lane.b32.xlu0 %v1786_v32, %s3030_s28  ;;  %v1944_v7 = vadd.f32 %v1943_v2, %v1942_v61  ;;  %v1956_v10 = vadd.f32 %v1955_v3, %v1954_v63 }
 0x56a   : > { %v1937_v11 = vadd.f32 %v1936_v4, %v1935_v0  ;;  %v1949_v14 = vadd.f32 %v1948_v5, %v1947_v1 }
 0x56b   : > { %v1945_v15 = vrot.slane %v1944_v7, 1  ;;  %v1957_v25 = vrot.slane %v1956_v10, 2 }
 0x56c   : > { %2099 = vrot.lane.b32.xlu1 %v1791_v22, %s3031_s30  ;;  %v1938_v27 = vrot.slane %v1937_v11, 1 }
 0x56d   : > { %2097 = vrot.lane.b32.xlu0 %v1786_v32, %s3031_s30  ;;  %v1950_v32 = vrot.slane %v1949_v14, 2  ;;  %v3475_v33 = vadd.f32 %v1945_v15, %v1944_v7 }
 0x56e   : > { %v3481_v44 = vadd.f32 %v1938_v27, %v1937_v11 }
 0x570   : > { %1971 = vrot.lane.b32.xlu1 %v1801_v39, %s3028_s26 }
 0x571   : > { %1969 = vrot.lane.b32.xlu0 %v1796_v42, %s3028_s26 }
 0x574   : > { %2015 = vrot.lane.b32.xlu1 %v1801_v39, %s3029_s29 }
 0x575   : > { %2013 = vrot.lane.b32.xlu0 %v1796_v42, %s3029_s29 }
 0x578   : > { %2059 = vrot.lane.b32.xlu1 %v1801_v39, %s3030_s28 }
 0x579   : > { %2057 = vrot.lane.b32.xlu0 %v1796_v42, %s3030_s28 }
 0x57c   : > { %2103 = vrot.lane.b32.xlu1 %v1801_v39, %s3031_s30 }
 0x57d   : > { %2101 = vrot.lane.b32.xlu0 %v1796_v42, %s3031_s30  ;;  %v3479_v42 = vadd.f32 %v1957_v25, %v1956_v10 }
 0x580   : > { %2267 = vrot.lane.b32.xlu1 %v3407_v47, %s3028_s26 }
 0x581   : > { %2265 = vrot.lane.b32.xlu0 %v3409_v48, %s3028_s26 }
 0x584   : > { %2291 = vrot.lane.b32.xlu1 %v3407_v47, %s3029_s29 }
 0x585   : > { %2289 = vrot.lane.b32.xlu0 %v3409_v48, %s3029_s29 }
 0x588   : > { %2271 = vrot.lane.b32.xlu1 %v3419_v51, %s3028_s26 }
 0x589   : > { %2269 = vrot.lane.b32.xlu0 %v3421_v52, %s3028_s26 }
 0x58c   : > { %2315 = vrot.lane.b32.xlu1 %v3407_v47, %s3030_s28 }
 0x58d   : > { %2313 = vrot.lane.b32.xlu0 %v3409_v48, %s3030_s28 }
 0x590   : > { %2295 = vrot.lane.b32.xlu1 %v3419_v51, %s3029_s29 }
 0x591   : > { %2293 = vrot.lane.b32.xlu0 %v3421_v52, %s3029_s29 }
 0x594   : > { %2339 = vrot.lane.b32.xlu1 %v3407_v47, %s3031_s30 }
 0x595   : > { %2337 = vrot.lane.b32.xlu0 %v3409_v48, %s3031_s30 }
 0x598   : > { %2319 = vrot.lane.b32.xlu1 %v3419_v51, %s3030_s28 }
 0x599   : > { %2317 = vrot.lane.b32.xlu0 %v3421_v52, %s3030_s28 }
 0x59c   : > { %2343 = vrot.lane.b32.xlu1 %v3419_v51, %s3031_s30 }
 0x59d   : > { %2341 = vrot.lane.b32.xlu0 %v3421_v52, %s3031_s30 }
 0x5a0   : > { %2372 = vperm.xlu1 %2965, %v2362_v53  }
 0x5a1   : > { %2367 = vperm.xlu0 %2964, %v2361_v54   ;;  %v3485_v54 = vadd.f32 %v1950_v32, %v1949_v14 }
 0x5a4   : > { %2382 = vperm.xlu1 %2965, %v2364_v55  }
 0x5a5   : > { %2377 = vperm.xlu0 %2964, %v2363_v56  }
 0x5d2   : > { %v1968_v6 = vpop.permute.xlu1 %1967 }
 0x5d3   : > { %v1978_v8 = vmul.f32 %v1968_v6, %v3377_v29  ;;  %v1966_v9 = vpop.permute.xlu0 %1965 }
 0x5d4   : > { %v1977_v12 = vmul.f32 %v1966_v9, %v3379_v31 }
 0x5d5   : > { %v1988_v13 = vsel %vm1068_vm6, %v1978_v8, 0.0 }
 0x5d6   : > { %v1989_v16 = vrot.slane %v1988_v13, 4  ;;  %v1981_v17 = vsel %vm1068_vm6, %v1977_v12, 0.0  ;;  %v2012_v18 = vpop.permute.xlu1 %2011 }
 0x5d7   : > { %v1982_v19 = vrot.slane %v1981_v17, 4  ;;  %v2022_v20 = vmul.f32 %v2012_v18, %v3377_v29  ;;  %v2010_v24 = vpop.permute.xlu0 %2009 }
 0x5d8   : > { %v1990_v26 = vadd.f32 %v1989_v16, %v1988_v13  ;;  %v2021_v28 = vmul.f32 %v2010_v24, %v3379_v31 }
 0x5d9   : > { %v1983_v22 = vadd.f32 %v1982_v19, %v1981_v17  ;;  %v2032_v30 = vsel %vm1068_vm6, %v2022_v20, 0.0 }
 0x5da   : > { %v1991_v34 = vrot.slane %v1990_v26, 2  ;;  %v2033_v35 = vrot.slane %v2032_v30, 4  ;;  %v2025_v36 = vsel %vm1068_vm6, %v2021_v28, 0.0  ;;  %v2056_v21 = vpop.permute.xlu1 %2055 }
 0x5db   : > { %v1984_v37 = vrot.slane %v1983_v22, 2  ;;  %v2026_v23 = vrot.slane %v2025_v36, 4  ;;  %v2066_v39 = vmul.f32 %v2056_v21, %v3377_v29  ;;  %v2054_v40 = vpop.permute.xlu0 %2053 }
 0x5dc   : > { %v1992_v43 = vadd.f32 %v1991_v34, %v1990_v26  ;;  %v2034_v45 = vadd.f32 %v2033_v35, %v2032_v30  ;;  %v2065_v46 = vmul.f32 %v2054_v40, %v3379_v31 }
 0x5dd   : > { %v1985_v49 = vadd.f32 %v1984_v37, %v1983_v22  ;;  %v2027_v50 = vadd.f32 %v2026_v23, %v2025_v36  ;;  %v2076_v53 = vsel %vm1068_vm6, %v2066_v39, 0.0 }
 0x5de   : > { %v1993_v55 = vrot.slane %v1992_v43, 1  ;;  %v2035_v56 = vrot.slane %v2034_v45, 2  ;;  %v2077_v57 = vrot.slane %v2076_v53, 4  ;;  %v2069_v58 = vsel %vm1068_vm6, %v2065_v46, 0.0  ;;  %v2100_v59 = vpop.permute.xlu1 %2099 }
 0x5df   : > { %v1986_v60 = vrot.slane %v1985_v49, 1  ;;  %v2028_v61 = vrot.slane %v2027_v50, 2  ;;  %v2070_v62 = vrot.slane %v2069_v58, 4  ;;  %v2110_v63 = vmul.f32 %v2100_v59, %v3377_v29  ;;  %v2098_v0 = vpop.permute.xlu0 %2097 }
 0x5e0   : > { %v3489_v1 = vadd.f32 %v1993_v55, %v1992_v43  ;;  %v2036_v2 = vadd.f32 %v2035_v56, %v2034_v45  ;;  %v2078_v3 = vadd.f32 %v2077_v57, %v2076_v53  ;;  %v2109_v4 = vmul.f32 %v2098_v0, %v3379_v31 }
 0x5e1   : > { %v3492_v5 = vadd.f32 %v1986_v60, %v1985_v49  ;;  %v2029_v6 = vadd.f32 %v2028_v61, %v2027_v50  ;;  %v2071_v7 = vadd.f32 %v2070_v62, %v2069_v58  ;;  %v2120_v8 = vsel %vm1068_vm6, %v2110_v63, 0.0 }
 0x5e2   : > { %v2142_v9 = vmax.f32 %v3475_v33, %v3489_v1  ;;  %v2037_v10 = vrot.slane %v2036_v2, 1  ;;  %v2079_v11 = vrot.slane %v2078_v3, 2  ;;  %v2121_v12 = vrot.slane %v2120_v8, 4  ;;  %v1972_v29 = vpop.permute.xlu1 %1971 }
 0x5e3   : > { %v2141_v13 = vmax.f32 %v3481_v44, %v3492_v5  ;;  %v2030_v14 = vrot.slane %v2029_v6, 1  ;;  %v2072_v15 = vrot.slane %v2071_v7, 2  ;;  %v2113_v31 = vsel %vm1068_vm6, %v2109_v4, 0.0  ;;  %v1970_v16 = vpop.permute.xlu0 %1969 }
 0x5e4   : > { %v3500_v17 = vadd.f32 %v2037_v10, %v2036_v2  ;;  %v2080_v18 = vadd.f32 %v2079_v11, %v2078_v3  ;;  %v2122_v19 = vadd.f32 %v2121_v12, %v2120_v8  ;;  %v2114_v20 = vrot.slane %v2113_v31, 4 }
 0x5e5   : > { %v3502_v24 = vadd.f32 %v2030_v14, %v2029_v6  ;;  %v2073_v25 = vadd.f32 %v2072_v15, %v2071_v7  ;;  %v1980_v26 = vmul.f32 %v1972_v29, %v3387_v38  ;;  %v1979_v27 = vmul.f32 %v1970_v16, %v3389_v41 }
 0x5e6   : > { %v2146_v28 = vmax.f32 %v2142_v9, %v3500_v17  ;;  %v2081_v22 = vrot.slane %v2080_v18, 1  ;;  %v2123_v30 = vrot.slane %v2122_v19, 2  ;;  %v2115_v32 = vadd.f32 %v2114_v20, %v2113_v31  ;;  %v2016_v34 = vpop.permute.xlu1 %2015 }
 0x5e7   : > { %v2145_v35 = vmax.f32 %v2141_v13, %v3502_v24  ;;  %v2074_v36 = vrot.slane %v2073_v25, 1  ;;  %v2002_v21 = vsel %vm1068_vm6, %v1980_v26, 0.0  ;;  %v1995_v37 = vsel %vm1068_vm6, %v1979_v27, 0.0  ;;  %v2014_v23 = vpop.permute.xlu0 %2013 }
 0x5e8   : > { %v2082_v39 = vadd.f32 %v2081_v22, %v2080_v18  ;;  %v2124_v40 = vadd.f32 %v2123_v30, %v2122_v19  ;;  %v2116_v43 = vrot.slane %v2115_v32, 2  ;;  %v2003_v45 = vrot.slane %v2002_v21, 4 }
 0x5e9   : > { %v3510_v46 = vadd.f32 %v2074_v36, %v2073_v25  ;;  %v1996_v49 = vrot.slane %v1995_v37, 4  ;;  %v2024_v50 = vmul.f32 %v2016_v34, %v3387_v38  ;;  %v2023_v53 = vmul.f32 %v2014_v23, %v3389_v41 }
 0x5ea   : > { %v2150_v55 = vmax.f32 %v2146_v28, %v2082_v39  ;;  %v2125_v56 = vrot.slane %v2124_v40, 1  ;;  %v2117_v57 = vadd.f32 %v2116_v43, %v2115_v32  ;;  %v2004_v58 = vadd.f32 %v2003_v45, %v2002_v21  ;;  %v2060_v4 = vpop.permute.xlu1 %2059 }
 0x5eb   : > { %v2149_v59 = vmax.f32 %v2145_v35, %v3510_v46  ;;  %v1997_v60 = vadd.f32 %v1996_v49, %v1995_v37  ;;  %v2046_v61 = vsel %vm1068_vm6, %v2024_v50, 0.0  ;;  %v2039_v62 = vsel %vm1068_vm6, %v2023_v53, 0.0  ;;  %v2058_v6 = vpop.permute.xlu0 %2057 }
 0x5ec   : > { %v2126_v63 = vadd.f32 %v2125_v56, %v2124_v40  ;;  %v2118_v0 = vrot.slane %v2117_v57, 1  ;;  %v2005_v2 = vrot.slane %v2004_v58, 2  ;;  %v2047_v3 = vrot.slane %v2046_v61, 4 }
 0x5ed   : > { %v1959_v7 = vrot.slane %v3479_v42, 1  ;;  %v1952_v8 = vrot.slane %v3485_v54, 1  ;;  %v1998_v9 = vrot.slane %v1997_v60, 2  ;;  %v2040_v10 = vrot.slane %v2039_v62, 4 }
 0x5ee   : > { %v3519_v11 = vmax.f32 %v2150_v55, %v2126_v63  ;;  %v3521_v12 = vadd.f32 %v2118_v0, %v2117_v57  ;;  %v2006_v29 = vadd.f32 %v2005_v2, %v2004_v58  ;;  %v2048_v13 = vadd.f32 %v2047_v3, %v2046_v61 }
 0x5ef   : > { %v1999_v14 = vadd.f32 %v1998_v9, %v1997_v60  ;;  %v2041_v15 = vadd.f32 %v2040_v10, %v2039_v62  ;;  %v2068_v31 = vmul.f32 %v2060_v4, %v3387_v38  ;;  %v2067_v16 = vmul.f32 %v2058_v6, %v3389_v41  ;;  %v2102_v43 = vpop.permute.xlu0 %2101 }
 0x5f0   : > { %v2182_v18 = vsub.f32 %v3500_v17, %v3519_v11  ;;  %v2194_v19 = vsub.f32 %v2082_v39, %v3519_v11  ;;  %v2206_v20 = vsub.f32 %v2126_v63, %v3519_v11  ;;  %v3530_v25 = vmax.f32 %v2149_v59, %v3521_v12  ;;  %v2104_v39 = vpop.permute.xlu1 %2103 }
 0x5f1   : > { %v2007_v26 = vrot.slane %v2006_v29, 1  ;;  %v2000_v27 = vrot.slane %v1999_v14, 1  ;;  %v2049_v28 = vrot.slane %v2048_v13, 2  ;;  %v2042_v22 = vrot.slane %v2041_v15, 2 }
 0x5f2   : > { %v2181_v30 = vsub.f32 %v3502_v24, %v3530_v25  ;;  %v3535_v32 = vadd.f32 %v1959_v7, %v3479_v42  ;;  %v3538_v34 = vadd.f32 %v1952_v8, %v3485_v54  ;;  %v2193_v17 = vsub.f32 %v3510_v46, %v3530_v25 }
 0x5f3   : > { %v2205_v35 = vsub.f32 %v3521_v12, %v3530_v25  ;;  %v3544_v36 = vadd.f32 %v2007_v26, %v2006_v29  ;;  %v3546_v21 = vadd.f32 %v2000_v27, %v1999_v14  ;;  %v2050_v37 = vadd.f32 %v2049_v28, %v2048_v13 }
 0x5f4   : > { %v2043_v23 = vadd.f32 %v2042_v22, %v2041_v15  ;;  %v2090_v24 = vsel %vm1068_vm6, %v2068_v31, 0.0  ;;  %v2083_v42 = vsel %vm1068_vm6, %v2067_v16, 0.0  ;;  %v2187_v40 = vmul.f32 1.442695, %v2182_v18 }
 0x5f5   : > { %v2144_v54 = vmax.f32 %v3535_v32, %v3544_v36  ;;  %v2143_v45 = vmax.f32 %v3538_v34, %v3546_v21  ;;  %v2051_v46 = vrot.slane %v2050_v37, 1  ;;  %v2199_v50 = vmul.f32 1.442695, %v2194_v19 }
 0x5f6   : > { %v2044_v49 = vrot.slane %v2043_v23, 1  ;;  %v2091_v53 = vrot.slane %v2090_v24, 4  ;;  %v2084_v55 = vrot.slane %v2083_v42, 4  ;;  %v2112_v56 = vmul.f32 %v2104_v39, %v3387_v38 }
 0x5f7   : > { %v2211_v57 = vmul.f32 1.442695, %v2206_v20  ;;  %v3555_v58 = vadd.f32 %v2051_v46, %v2050_v37  ;;  %v2111_v60 = vmul.f32 %v2102_v43, %v3389_v41  ;;  %2966 = vpow2.f32 %v2187_v40 }
 0x5f8   : > { %v3557_v59 = vadd.f32 %v2044_v49, %v2043_v23  ;;  %v2092_v61 = vadd.f32 %v2091_v53, %v2090_v24  ;;  %v2085_v62 = vadd.f32 %v2084_v55, %v2083_v42  ;;  %v2134_v63 = vsel %vm1068_vm6, %v2112_v56, 0.0 }
 0x5f9   : > { %v2148_v0 = vmax.f32 %v2144_v54, %v3555_v58  ;;  %v2135_v3 = vrot.slane %v2134_v63, 4  ;;  %v2127_v4 = vsel %vm1068_vm6, %v2111_v60, 0.0  ;;  %v2158_v8 = vsub.f32 %v3475_v33, %v3519_v11 }
 0x5fa   : > { %v2147_v2 = vmax.f32 %v2143_v45, %v3557_v59  ;;  %v2093_v38 = vrot.slane %v2092_v61, 2  ;;  %v2086_v6 = vrot.slane %v2085_v62, 2  ;;  %v2128_v7 = vrot.slane %v2127_v4, 4 }
 0x5fb   : > { %v2136_v9 = vadd.f32 %v2135_v3, %v2134_v63  ;;  %v2170_v41 = vsub.f32 %v3489_v1, %v3519_v11  ;;  %v2157_v10 = vsub.f32 %v3481_v44, %v3530_v25  ;;  %v2169_v12 = vsub.f32 %v3492_v5, %v3530_v25 }
 0x5fc   : > { %v2094_v29 = vadd.f32 %v2093_v38, %v2092_v61  ;;  %v2087_v13 = vadd.f32 %v2086_v6, %v2085_v62  ;;  %v2129_v14 = vadd.f32 %v2128_v7, %v2127_v4  ;;  %v2163_v15 = vmul.f32 1.442695, %v2158_v8  ;;  %v3604_v38 = vpop.permute.xlu0 %2265 }
 0x5fd   : > { %2968 = vpow2.f32 %v2199_v50  ;;  %v2137_v31 = vrot.slane %v2136_v9, 2  ;;  %v2175_v16 = vmul.f32 1.442695, %v2170_v41  ;;  %v2161_v18 = vmul.f32 1.442695, %v2157_v10 }
 0x5fe   : > { %v2095_v19 = vrot.slane %v2094_v29, 1  ;;  %v2088_v33 = vrot.slane %v2087_v13, 1  ;;  %v2130_v20 = vrot.slane %v2129_v14, 2  ;;  %2970 = vpow2.f32 %v2163_v15 }
 0x5ff   : > { %v2185_v26 = vmul.f32 1.442695, %v2181_v30  ;;  %v2138_v1 = vadd.f32 %v2137_v31, %v2136_v9  ;;  %2972 = vpow2.f32 %v2175_v16  ;;  %v2173_v11 = vmul.f32 1.442695, %v2169_v12 }
 0x600   : > { %v2096_v44 = vadd.f32 %v2095_v19, %v2094_v29  ;;  %v3572_v27 = vadd.f32 %v2088_v33, %v2087_v13  ;;  %v2131_v5 = vadd.f32 %v2130_v20, %v2129_v14  ;;  %2974 = vpow2.f32 %v2161_v18  ;;  %v2290_v31 = vpop.permute.xlu0 %2289 }
 0x601   : > { %v2197_v25 = vmul.f32 1.442695, %v2193_v17  ;;  %v2139_v28 = vrot.slane %v2138_v1, 1  ;;  %2976 = vpow2.f32 %v2173_v11  ;;  %v3574_v22 = vpop.eup %2966  ;;  %v2209_v37 = vmul.f32 1.442695, %v2205_v35 }
 0x602   : > { %v2152_v23 = vmax.f32 %v2148_v0, %v2096_v44  ;;  %v2151_v24 = vmax.f32 %v2147_v2, %v3572_v27  ;;  %v2132_v42 = vrot.slane %v2131_v5, 1  ;;  %2978 = vpow2.f32 %v2185_v26 }
 0x603   : > { %v2140_v30 = vadd.f32 %v2139_v28, %v2138_v1  ;;  %2980 = vpow2.f32 %v2211_v57 }
 0x604   : > { %v2133_v39 = vadd.f32 %v2132_v42, %v2131_v5  ;;  %2982 = vpow2.f32 %v2197_v25  ;;  %v3617_v26 = vpop.permute.xlu0 %2269 }
 0x605   : > { %v2156_v40 = vmax.f32 %v2152_v23, %v2140_v30  ;;  %2984 = vpow2.f32 %v2209_v37 }
 0x606   : > { %v2155_v54 = vmax.f32 %v2151_v24, %v2133_v39 }
 0x607   : > { %v3577_v43 = vpop.eup %2968  ;;  %v2184_v17 = vsub.f32 %v3555_v58, %v2156_v40  ;;  %v2196_v45 = vsub.f32 %v2096_v44, %v2156_v40  ;;  %v2208_v46 = vsub.f32 %v2140_v30, %v2156_v40  ;;  %v2160_v35 = vsub.f32 %v3535_v32, %v2156_v40 }
 0x608   : > { %v3581_v49 = vpop.eup %2970  ;;  %v2183_v50 = vsub.f32 %v3557_v59, %v2155_v54  ;;  %v2195_v53 = vsub.f32 %v3572_v27, %v2155_v54  ;;  %v2207_v55 = vsub.f32 %v2133_v39, %v2155_v54  ;;  %v2172_v56 = vsub.f32 %v3544_v36, %v2156_v40  ;;  %v3596_v59 = vpop.permute.xlu1 %2267 }
 0x609   : > { %v3586_v57 = vpop.eup %2972  ;;  %v2159_v60 = vsub.f32 %v3538_v34, %v2155_v54  ;;  %v2191_v32 = vmul.f32 1.442695, %v2184_v17  ;;  %v2171_v36 = vsub.f32 %v3546_v21, %v2155_v54  ;;  %v2167_v34 = vmul.f32 1.442695, %v2160_v35  ;;  %v2314_v39 = vpop.permute.xlu0 %2313 }
 0x60a   : > { %v3589_v61 = vpop.eup %2974  ;;  %v2218_v58 = vadd.f32 %v3586_v57, %v3581_v49  ;;  %v2179_v8 = vmul.f32 1.442695, %v2172_v56  ;;  %v2203_v14 = vmul.f32 1.442695, %v2196_v45  ;;  %v2215_v15 = vmul.f32 1.442695, %v2208_v46 }
 0x60b   : > { %v3593_v62 = vpop.eup %2976  ;;  %2986 = vpow2.f32 %v2191_v32  ;;  %v2165_v21 = vmul.f32 1.442695, %v2159_v60  ;;  %v2177_v13 = vmul.f32 1.442695, %v2171_v36  ;;  %v2189_v16 = vmul.f32 1.442695, %v2183_v50 }
 0x60c   : > { %v2222_v63 = vadd.f32 %v3574_v22, %v2218_v58  ;;  %v2217_v0 = vadd.f32 %v3593_v62, %v3589_v61  ;;  %v3601_v2 = vpop.eup %2978  ;;  %2988 = vpow2.f32 %v2167_v34  ;;  %v2292_v29 = vpop.permute.xlu1 %2291  ;;  %v2201_v18 = vmul.f32 1.442695, %v2195_v53 }
 0x60d   : > { %v2981_v3 = vpop.eup %2980  ;;  %v2213_v33 = vmul.f32 1.442695, %v2207_v55 }
 0x60e   : > { %v2226_v4 = vadd.f32 %v3577_v43, %v2222_v63  ;;  %v2221_v6 = vadd.f32 %v3601_v2, %v2217_v0  ;;  %v3607_v7 = vpop.eup %2982 }
 0x60f   : > { %v3609_v9 = vpop.eup %2984 }
 0x610   : > { %v2230_v41 = vadd.f32 %v2981_v3, %v2226_v4  ;;  %v2225_v10 = vadd.f32 %v3607_v7, %v2221_v6  ;;  %v3613_v19 = vpop.permute.xlu1 %2271 }
 0x612   : > { %2990 = vrcp.f32 %v2230_v41  ;;  %v2229_v12 = vadd.f32 %v3609_v9, %v2225_v10 }
 0x613   : > { %2992 = vpow2.f32 %v2179_v8 }
 0x614   : > { %2994 = vrcp.f32 %v2229_v12  ;;  %v2316_v28 = vpop.permute.xlu1 %2315 }
 0x615   : > { %2996 = vpow2.f32 %v2165_v21  ;;  %v3615_v20 = vpop.eup %2986 }
 0x616   : > { %2998 = vpow2.f32 %v2177_v13  ;;  %v3619_v1 = vpop.eup %2988 }
 0x617   : > { %3000 = vpow2.f32 %v2203_v14 }
 0x618   : > { %3002 = vpow2.f32 %v2215_v15  ;;  %v2296_v0 = vpop.permute.xlu1 %2295 }
 0x619   : > { %3004 = vpow2.f32 %v2189_v16 }
 0x61a   : > { %3006 = vpow2.f32 %v2201_v18 }
 0x61b   : > { %3008 = vpow2.f32 %v2213_v33 }
 0x61c   : > { %v2991_v11 = vpop.eup %2990 }
 0x61d   : > { %v3621_v44 = vpop.eup %2992  ;;  %v2238_v27 = vmul.f32 %v2991_v11, %v2230_v41  ;;  %v2294_v41 = vpop.permute.xlu0 %2293 }
 0x61e   : > { %v2995_v5 = vpop.eup %2994  ;;  %v2220_v25 = vadd.f32 %v3621_v44, %v3619_v1 }
 0x61f   : > { %v3625_v37 = vpop.eup %2996  ;;  %v2242_v23 = vsub.f32 2.0, %v2238_v27  ;;  %v2237_v24 = vmul.f32 %v2995_v5, %v2229_v12 }
 0x620   : > { %v3627_v42 = vpop.eup %2998  ;;  %v2224_v30 = vadd.f32 %v3615_v20, %v2220_v25 }
 0x621   : > { %v3001_v40 = vpop.eup %3000  ;;  %v2246_v54 = vmul.f32 %v2991_v11, %v2242_v23  ;;  %v2241_v17 = vsub.f32 2.0, %v2237_v24  ;;  %v2219_v45 = vadd.f32 %v3627_v42, %v3625_v37  ;;  %v2338_v27 = vpop.permute.xlu0 %2337 }
 0x622   : > { %v3003_v46 = vpop.eup %3002  ;;  %v2228_v35 = vadd.f32 %v3001_v40, %v2224_v30 }
 0x623   : > { %v3632_v50 = vpop.eup %3004  ;;  %v2250_v53 = vmul.f32 %v3581_v49, %v2246_v54  ;;  %v2258_v55 = vmul.f32 %v3586_v57, %v2246_v54  ;;  %v2245_v56 = vmul.f32 %v2995_v5, %v2241_v17  ;;  %v2286_v60 = vmul.f32 %v3574_v22, %v2246_v54 }
 0x624   : > { %v2232_v58 = vadd.f32 %v3003_v46, %v2228_v35  ;;  %v2223_v32 = vadd.f32 %v3632_v50, %v2219_v45  ;;  %v2310_v63 = vmul.f32 %v3577_v43, %v2246_v54  ;;  %v2334_v36 = vmul.f32 %v2981_v3, %v2246_v54  ;;  %v3007_v34 = vpop.eup %3006 }
 0x625   : > { %v2254_v4 = vmul.f32 %v2250_v53, %v3407_v47  ;;  %v2278_v6 = vmul.f32 %v3596_v59, %v2258_v55  ;;  %v2249_v8 = vmul.f32 %v3589_v61, %v2245_v56  ;;  %v2257_v49 = vmul.f32 %v3593_v62, %v2245_v56  ;;  %v3009_v10 = vpop.eup %3008 }
 0x626   : > { %v2285_v57 = vmul.f32 %v3601_v2, %v2245_v56  ;;  %3010 = vrcp.f32 %v2232_v58  ;;  %v2227_v22 = vadd.f32 %v3007_v34, %v2223_v32  ;;  %v2302_v12 = vmul.f32 %v2292_v29, %v2286_v60  ;;  %v2340_v2 = vpop.permute.xlu1 %2339 }
 0x627   : > { %v2282_v21 = vadd.f32 %v2278_v6, %v2254_v4  ;;  %v2253_v43 = vmul.f32 %v2249_v8, %v3409_v48  ;;  %v2277_v3 = vmul.f32 %v3604_v38, %v2257_v49  ;;  %v2326_v47 = vmul.f32 %v2316_v28, %v2310_v63 }
 0x628   : > { %v2231_v13 = vadd.f32 %v3009_v10, %v2227_v22  ;;  %v2309_v59 = vmul.f32 %v3607_v7, %v2245_v56  ;;  %v2301_v15 = vmul.f32 %v2290_v31, %v2285_v57  ;;  %v2333_v62 = vmul.f32 %v3609_v9, %v2245_v56 }
 0x629   : > { %v2281_v14 = vadd.f32 %v2277_v3, %v2253_v43  ;;  %v2306_v61 = vadd.f32 %v2302_v12, %v2282_v21  ;;  %v2350_v11 = vmul.f32 %v2340_v2, %v2334_v36 }
 0x62a   : > { %3012 = vrcp.f32 %v2231_v13  ;;  %v2325_v33 = vmul.f32 %v2314_v39, %v2309_v59  ;;  %v2349_v38 = vmul.f32 %v2338_v27, %v2333_v62  ;;  %v2320_v35 = vpop.permute.xlu1 %2319 }
 0x62b   : > { %v2305_v16 = vadd.f32 %v2301_v15, %v2281_v14  ;;  %v2330_v18 = vadd.f32 %v2326_v47, %v2306_v61 }
 0x62d   : > { %v2329_v48 = vadd.f32 %v2325_v33, %v2305_v16  ;;  %v2354_v5 = vadd.f32 %v2350_v11, %v2330_v18 }
 0x62e   : > { %v2344_v8 = vpop.permute.xlu1 %2343 }
 0x62f   : > { %v2353_v29 = vadd.f32 %v2349_v38, %v2329_v48 }
 0x630   : > { %v3011_v25 = vpop.eup %3010 }
 0x631   : > { %v2240_v28 = vmul.f32 %v3011_v25, %v2232_v58  ;;  %v2938_v23 = vpack.c.bf16 %v2354_v5, %v2353_v29 }
 0x632   : > { %v2373_v3 = vpop.permute.xlu1 %2372 }
 0x633   : > { %v2244_v7 = vsub.f32 2.0, %v2240_v28  ;;  %2939 = vmatprep.subr.bf16.mxu1 %v2938_v23 }
 0x634   : > { %v3013_v24 = vpop.eup %3012  ;;  %2941 = vmatpush3.bf16.msra.mxu1 %v2938_v23 }
 0x635   : > { %v2248_v31 = vmul.f32 %v3011_v25, %v2244_v7  ;;  %v2239_v9 = vmul.f32 %v3013_v24, %v2231_v13 }
 0x636   : > { %v2383_v61 = vpop.permute.xlu1 %2382 }
 0x637   : > { %v2252_v30 = vmul.f32 %v3619_v1, %v2248_v31  ;;  %v2260_v54 = vmul.f32 %v3621_v44, %v2248_v31  ;;  %v2243_v39 = vsub.f32 2.0, %v2239_v9  ;;  %v2288_v17 = vmul.f32 %v3615_v20, %v2248_v31  ;;  %v2318_v44 = vpop.permute.xlu0 %2317 }
 0x638   : > { %v2312_v45 = vmul.f32 %v3001_v40, %v2248_v31  ;;  %v2336_v53 = vmul.f32 %v3003_v46, %v2248_v31 }
 0x639   : > { %v2256_v55 = vmul.f32 %v2252_v30, %v3419_v51  ;;  %v2280_v56 = vmul.f32 %v3613_v19, %v2260_v54  ;;  %v2247_v60 = vmul.f32 %v3013_v24, %v2243_v39  ;;  %v2304_v58 = vmul.f32 %v2296_v0, %v2288_v17 }
 0x63a   : > { %v2328_v51 = vmul.f32 %v2320_v35, %v2312_v45  ;;  %v2352_v57 = vmul.f32 %v2344_v8, %v2336_v53 }
 0x63b   : > { %v2284_v32 = vadd.f32 %v2280_v56, %v2256_v55  ;;  %v2251_v63 = vmul.f32 %v3625_v37, %v2247_v60  ;;  %v2259_v36 = vmul.f32 %v3627_v42, %v2247_v60  ;;  %v2287_v1 = vmul.f32 %v3632_v50, %v2247_v60  ;;  %v2342_v42 = vpop.permute.xlu0 %2341 }
 0x63c   : > { %v2311_v4 = vmul.f32 %v3007_v34, %v2247_v60  ;;  %v2335_v6 = vmul.f32 %v3009_v10, %v2247_v60 }
 0x63d   : > { %v2255_v20 = vmul.f32 %v2251_v63, %v3421_v52  ;;  %v2279_v40 = vmul.f32 %v3617_v26, %v2259_v36  ;;  %v2308_v46 = vadd.f32 %v2304_v58, %v2284_v32  ;;  %v2303_v49 = vmul.f32 %v2294_v41, %v2287_v1  ;;  %v2358_v52 = vld [vmem:[%s3697_s16 + $0x8] sm:$0xff]  ;;  %v2359_v26 = vld [vmem:[%s3697_s16 + $0x10] sm:$0xff]  ;;  %v2360_v41 = vld [vmem:[%s3697_s16 + $0x18] sm:$0xff] }
 0x63e   : > { %v2327_v37 = vmul.f32 %v2318_v44, %v2311_v4  ;;  %v2351_v43 = vmul.f32 %v2342_v42, %v2335_v6 }
 0x63f   : > { %v2283_v19 = vadd.f32 %v2279_v40, %v2255_v20  ;;  %v2332_v0 = vadd.f32 %v2328_v51, %v2308_v46  ;;  %v2368_v12 = vpop.permute.xlu0 %2367 }
 0x641   : > { %v2307_v22 = vadd.f32 %v2303_v49, %v2283_v19  ;;  %v2356_v21 = vadd.f32 %v2352_v57, %v2332_v0 }
 0x643   : > { %v2331_v50 = vadd.f32 %v2327_v37, %v2307_v22  ;;  %v2378_v62 = vpop.permute.xlu0 %2377 }
 0x645   : > { %v2355_v34 = vadd.f32 %v2351_v43, %v2331_v50 }
 0x647   : > { %v2942_v10 = vpack.c.bf16 %v2356_v21, %v2355_v34 }
 0x649   : > { %2943 = vmatprep.subr.bf16.mxu1 %v2942_v10 }
 0x64a   : > { %2945 = vmatpush3.bf16.msra.mxu1 %v2942_v10 }
 0x64d   : > { %2860 = vmatmul.mubr.msk.f32.vlgmr.msra.gmra.mrb[14].mxu1 %vm709_vm0, %v2358_v52 }
 0x64e   : > { %2862 = vmatprep.mubr.msk.f32.mxu1 %vm709_vm0, %v2359_v26 }
 0x651   : > { %2863 = vmatmul.mubr.msk.f32.gmra.mrb[16].mxu1 %vm709_vm0, %v2360_v41 }
 0x720   : > { %v2861_v13 = vpop.f32.mrb[14].mxu1 }
 0x721   : > { %v2469_v47 = vadd.f32 %v2861_v13, %v2373_v3  ;;  %v2463_v59 = vpop.f32.mrb[15].mxu1 }
 0x722   : > { %v2464_v14 = vadd.f32 %v2463_v59, %v2368_v12 }
 0x723   : > { %2483 = vst.msk [vmem:[%s635_s2 + $0x8] sm:$0xff] %vm1068_vm6, %v2469_v47 }
 0x724   : > { %2482 = vst.msk [vmem:[%s635_s2] sm:$0xff] %vm1068_vm6, %v2464_v14  ;;  %v2864_v15 = vpop.f32.mrb[16].mxu1 }
 0x725   : > { %v2479_v2 = vadd.f32 %v2864_v15, %v2383_v61  ;;  %v2473_v16 = vpop.f32.mrb[17].mxu1 }
 0x726   : > { %v2474_v18 = vadd.f32 %v2473_v16, %v2378_v62 }
 0x727   : > { %2485 = vst.msk [vmem:[%s635_s2 + $0x18] sm:$0xff] %vm1068_vm6, %v2479_v2 }
 0x728   : > { %2484 = vst.msk [vmem:[%s635_s2 + $0x10] sm:$0xff] %vm1068_vm6, %v2474_v18 }
 0x729 PF: > { %s28_s27 = sadd.s32 1, %s3020_s27  }
 0x72a   : > { %p25_p4 = scmp.ge.s32.totalorder %s28_s27, 4  }
 0x72c   :  { %27 = sbr.rel (!%p25_p4) target bundleno = 4 (0x4), region = 131 }

</bundles_post_ra>
